<compile_context>
chip_gen: v7x
topology: tpu7x:2x2x1
jax: 0.10.0
libtpu: 0.0.40
codegen_flags: <defaults>
</compile_context>

<pallas_src>
import functools

import jax
import jax.numpy as jnp
from jax.experimental import pallas as pl
from jax.experimental.pallas import tpu as pltpu

# TODO(synk): the SEAttention class definition was not included in the spec; the standard
# squeeze-and-excite block (AdaptiveAvgPool2d(1) -> Linear(C, C//16, bias=False) -> ReLU
# -> Linear(C//16, C, bias=False) -> Sigmoid -> channel scale) with reduction=16 is assumed.
SE_REDUCTION = 16
EPS = 1e-5


def _fused_kernel(mask_ref, x_ref, w1_ref, s1_ref, b1_ref, wse1_ref, wse2_ref,
                  w2_ref, s2_ref, b2_ref, o_ref,
                  xp1_ref, imc1_ref, xp2_ref, imc2_ref, *, H, W):
    """One image per grid step. Activations are (C, HW) with HW on the lane axis.

    mask_ref : (2, HW)  row0: 1.0 except output col w==0, row1: 1.0 except w==W-1
    x_ref    : (1, Cin, HW)        flattened NCHW input image
    w*_ref   : (Cout, 9*Cin)       folded conv weights, K ordered (dy, dx, cin)
    s*_ref/b*_ref : (Cout, 1)      folded BatchNorm scale / bias
    wse1_ref : (Chid, Cmid), wse2_ref : (Cmid, Chid)   SE FC weights
    o_ref    : (1, Cout, HW)
    xp*_ref  : (C, (H+2)*W + 2)    row-padded flattened activation (VMEM scratch)
    imc*_ref : (9*C, HW)           im2col K-matrix (VMEM scratch)
    """
    HW = H * W
    mask_l = mask_ref[0:1, :]   # kills the left-edge wrap for dx == 0 taps
    mask_r = mask_ref[1:2, :]   # kills the right-edge wrap for dx == 2 taps

    def conv_bn_relu(act, xp_ref, imc_ref, w_ref, s_ref, b_ref):
        C = act.shape[0]
        # Row-padded flattened buffer: xp[c, 1 + r*W + col]; rows 1..H = act,
        # rows 0 and H+1 (plus one guard element at each end) stay zero (padding=1).
        xp_ref[...] = jnp.zeros_like(xp_ref)
        xp_ref[:, W + 1:W + 1 + HW] = act
        # im2col: 9 shifted windows -> one (9C, HW) K-matrix, entirely in VMEM.
        for dy in range(3):
            for dx in range(3):
                start = dy * W + dx
                patch = xp_ref[:, start:start + HW]
                if dx == 0:
                    patch = patch * mask_l
                elif dx == 2:
                    patch = patch * mask_r
                t = dy * 3 + dx
                imc_ref[t * C:(t + 1) * C, :] = patch
        # Single MXU GEMM: K = 9*C, N = HW lane-dense columns, f32 accumulate.
        y = jnp.dot(w_ref[...], imc_ref[...], preferred_element_type=jnp.float32)
        # Folded-BN affine + ReLU epilogue on the VPU.
        return jnp.maximum(y * s_ref[...] + b_ref[...], 0.0)

    x = x_ref[0].astype(jnp.float32)                                    # (Cin, HW)
    a1 = conv_bn_relu(x, xp1_ref, imc1_ref, w1_ref, s1_ref, b1_ref)     # (Cmid, HW)

    # --- SE attention: squeeze (global mean) -> FC/ReLU -> FC/sigmoid -> scale ---
    pooled = jnp.mean(a1, axis=1, keepdims=True)                        # (Cmid, 1)
    z = jnp.maximum(
        jnp.dot(wse1_ref[...], pooled, preferred_element_type=jnp.float32), 0.0)
    gate = jax.nn.sigmoid(
        jnp.dot(wse2_ref[...], z, preferred_element_type=jnp.float32))  # (Cmid, 1)
    a1 = a1 * gate                                                      # per-channel scale

    a2 = conv_bn_relu(a1, xp2_ref, imc2_ref, w2_ref, s2_ref, b2_ref)    # (Cout, HW)
    o_ref[0] = a2.astype(o_ref.dtype)


def _fold_conv_bn(w_hwio, gamma, beta, mean, var, eps=EPS):
    """(3,3,Cin,Cout) HWIO weights + BN stats -> (Cout, 9*Cin) matrix + (Cout,1) affine."""
    cout = w_hwio.shape[-1]
    w_mat = jnp.transpose(w_hwio, (3, 0, 1, 2)).reshape(cout, -1).astype(jnp.float32)
    scale = (gamma / jnp.sqrt(var + eps)).astype(jnp.float32)
    bias = (beta - mean * scale).astype(jnp.float32)
    return w_mat, scale.reshape(cout, 1), bias.reshape(cout, 1)


@jax.jit
def double_conv_attention_se_forward(x_nchw, params1, se_params, params2):
    """x_nchw: (N, Cin, H, W) f32 -> (N, Cout, H, W) f32."""
    N, Cin, H, W = x_nchw.shape
    HW = H * W
    w1m, s1, b1 = _fold_conv_bn(*params1)
    w2m, s2, b2 = _fold_conv_bn(*params2)
    wse1, wse2 = se_params
    Cmid, Cout, Chid = w1m.shape[0], w2m.shape[0], wse1.shape[0]

    # Layout plumbing only (contiguous collapse), no transpose / pad HBM pass.
    x_flat = x_nchw.reshape(N, Cin, HW).astype(jnp.float32)

    # Masks zeroing the two wrapped columns of the row-padded flattened windows.
    wcol = jnp.arange(HW, dtype=jnp.int32) % W
    masks = jnp.stack([(wcol != 0).astype(jnp.float32),
                       (wcol != W - 1).astype(jnp.float32)], axis=0)     # (2, HW)

    P = (H + 2) * W + 2  # row-padded flattened buffer length

    kernel = functools.partial(_fused_kernel, H=H, W=W)
    out_flat = pl.pallas_call(
        kernel,
        out_shape=jax.ShapeDtypeStruct((N, Cout, HW), jnp.float32),
        grid_spec=pltpu.PrefetchScalarGridSpec(
            num_scalar_prefetch=0,
            grid=(N,),  # one image / step; "parallel" so v7x's 2 TensorCores share work
            in_specs=[
                pl.BlockSpec((2, HW), lambda b: (0, 0)),             # edge masks
                pl.BlockSpec((1, Cin, HW), lambda b: (b, 0, 0)),     # input image
                pl.BlockSpec((Cmid, 9 * Cin), lambda b: (0, 0)),     # conv1 weights
                pl.BlockSpec((Cmid, 1), lambda b: (0, 0)),           # bn1 scale
                pl.BlockSpec((Cmid, 1), lambda b: (0, 0)),           # bn1 bias
                pl.BlockSpec((Chid, Cmid), lambda b: (0, 0)),        # SE fc1
                pl.BlockSpec((Cmid, Chid), lambda b: (0, 0)),        # SE fc2
                pl.BlockSpec((Cout, 9 * Cmid), lambda b: (0, 0)),    # conv2 weights
                pl.BlockSpec((Cout, 1), lambda b: (0, 0)),           # bn2 scale
                pl.BlockSpec((Cout, 1), lambda b: (0, 0)),           # bn2 bias
            ],
            out_specs=pl.BlockSpec((1, Cout, HW), lambda b: (b, 0, 0)),
            scratch_shapes=[
                pltpu.VMEM((Cin, P), jnp.float32),        # padded input, conv1
                pltpu.VMEM((9 * Cin, HW), jnp.float32),   # im2col, conv1
                pltpu.VMEM((Cmid, P), jnp.float32),       # padded mid activation, conv2
                pltpu.VMEM((9 * Cmid, HW), jnp.float32),  # im2col, conv2
            ],
        ),
        compiler_params=pltpu.CompilerParams(
            dimension_semantics=("parallel",)),
    )(masks, x_flat, w1m, s1, b1, wse1, wse2, w2m, s2, b2)

    return out_flat.reshape(N, Cout, H, W)


def make_conv_params(key, cin, cout):
    """nn.Conv2d(cin, cout, 3, bias=False) + BatchNorm2d(cout) inference params (HWIO)."""
    k_w, k_g, k_b, k_m, k_v = jax.random.split(key, 5)
    bound = 1.0 / jnp.sqrt(cin * 9)
    w = jax.random.uniform(k_w, (3, 3, cin, cout), jnp.float32, -bound, bound)
    gamma = 1.0 + 0.1 * jax.random.normal(k_g, (cout,), jnp.float32)
    beta = 0.1 * jax.random.normal(k_b, (cout,), jnp.float32)
    mean = 0.1 * jax.random.normal(k_m, (cout,), jnp.float32)
    var = jnp.abs(1.0 + 0.1 * jax.random.normal(k_v, (cout,), jnp.float32))
    return w, gamma, beta, mean, var


def make_se_params(key, channels, reduction=SE_REDUCTION):
    hidden = max(channels // reduction, 1)
    k1, k2 = jax.random.split(key)
    b1 = 1.0 / jnp.sqrt(channels)
    b2 = 1.0 / jnp.sqrt(hidden)
    w_fc1 = jax.random.uniform(k1, (hidden, channels), jnp.float32, -b1, b1)
    w_fc2 = jax.random.uniform(k2, (channels, hidden), jnp.float32, -b2, b2)
    return w_fc1, w_fc2


def _reference(x_nchw, params1, se_params, params2, eps=EPS):
    """Pure-JAX reference (lax conv + SE) for the correctness check."""
    def conv_bn_relu(x, w, gamma, beta, mean, var):
        y = jax.lax.conv_general_dilated(
            x, w, window_strides=(1, 1), padding=((1, 1), (1, 1)),
            dimension_numbers=("NCHW", "HWIO", "NCHW"))
        scale = gamma / jnp.sqrt(var + eps)
        bias = beta - mean * scale
        return jnp.maximum(y * scale[None, :, None, None] + bias[None, :, None, None], 0.0)

    x = conv_bn_relu(x_nchw, *params1)
    w_fc1, w_fc2 = se_params
    pooled = jnp.mean(x, axis=(2, 3))                 # (N, C)
    z = jnp.maximum(pooled @ w_fc1.T, 0.0)            # (N, Chid)
    gate = jax.nn.sigmoid(z @ w_fc2.T)                # (N, C)
    x = x * gate[:, :, None, None]
    x = conv_bn_relu(x, *params2)
    return x


if __name__ == "__main__":
    key = jax.random.PRNGKey(0)
    k_x, k_p1, k_se, k_p2 = jax.random.split(key, 4)

    N, Cin, H, W = 2, 4, 16, 16
    Cmid = Cout = 32   # mid_channels defaults to out_channels

    x = jax.random.normal(k_x, (N, Cin, H, W), jnp.float32)
    params1 = make_conv_params(k_p1, Cin, Cmid)
    se_params = make_se_params(k_se, Cmid)
    params2 = make_conv_params(k_p2, Cmid, Cout)

    out = double_conv_attention_se_forward(x, params1, se_params, params2)
    out = jax.block_until_ready(out)

    ref = _reference(x, params1, se_params, params2)
    assert out.shape == (N, Cout, H, W), out.shape
    err = float(jnp.max(jnp.abs(out - ref)))
    assert err < 1e-3, f"mismatch vs reference, max abs err={err}"

    print("KERNEL_OK")
</pallas_src>

<mosaic_0001>
module attributes {stable_mosaic.version = 11 : i64} {
  func.func @_fused_kernel(%arg0: i32, %arg1: memref<2x256xf32, #tpu.memory_space<vmem>>, %arg2: memref<1x4x256xf32, #tpu.memory_space<vmem>>, %arg3: memref<32x36xf32, #tpu.memory_space<vmem>>, %arg4: memref<32x1xf32, #tpu.memory_space<vmem>>, %arg5: memref<32x1xf32, #tpu.memory_space<vmem>>, %arg6: memref<2x32xf32, #tpu.memory_space<vmem>>, %arg7: memref<32x2xf32, #tpu.memory_space<vmem>>, %arg8: memref<32x288xf32, #tpu.memory_space<vmem>>, %arg9: memref<32x1xf32, #tpu.memory_space<vmem>>, %arg10: memref<32x1xf32, #tpu.memory_space<vmem>>, %arg11: memref<1x32x256xf32, #tpu.memory_space<vmem>>, %arg12: memref<4x290xf32, #tpu.memory_space<vmem>>, %arg13: memref<36x256xf32, #tpu.memory_space<vmem>>, %arg14: memref<32x290xf32, #tpu.memory_space<vmem>>, %arg15: memref<288x256xf32, #tpu.memory_space<vmem>>) attributes {dimension_semantics = [#tpu.dimension_semantics<parallel>], iteration_bounds = array<i64: 2>, scalar_prefetch = 0 : i64, scratch_operands = 4 : i64, tpu.core_type = #tpu.core_type<tc>, window_params = [{pipeline_mode = #tpu.pipeline_mode<synchronous>, transform_indices = @transform_0, window_bounds = array<i64: 2, 256>}, {transform_indices = @transform_1, window_bounds = array<i64: 1, 4, 256>}, {pipeline_mode = #tpu.pipeline_mode<synchronous>, transform_indices = @transform_2, window_bounds = array<i64: 32, 36>}, {pipeline_mode = #tpu.pipeline_mode<synchronous>, transform_indices = @transform_3, window_bounds = array<i64: 32, 1>}, {pipeline_mode = #tpu.pipeline_mode<synchronous>, transform_indices = @transform_4, window_bounds = array<i64: 32, 1>}, {pipeline_mode = #tpu.pipeline_mode<synchronous>, transform_indices = @transform_5, window_bounds = array<i64: 2, 32>}, {pipeline_mode = #tpu.pipeline_mode<synchronous>, transform_indices = @transform_6, window_bounds = array<i64: 32, 2>}, {pipeline_mode = #tpu.pipeline_mode<synchronous>, transform_indices = @transform_7, window_bounds = array<i64: 32, 288>}, {pipeline_mode = #tpu.pipeline_mode<synchronous>, transform_indices = @transform_8, window_bounds = array<i64: 32, 1>}, {pipeline_mode = #tpu.pipeline_mode<synchronous>, transform_indices = @transform_9, window_bounds = array<i64: 32, 1>}, {transform_indices = @transform_10, window_bounds = array<i64: 1, 32, 256>}]} {
    %c0 = arith.constant 0 : index
    %c0_0 = arith.constant 0 : index
    %0 = vector.load %arg1[%c0, %c0_0] : memref<2x256xf32, #tpu.memory_space<vmem>>, vector<1x256xf32>
    %c1 = arith.constant 1 : index
    %c0_1 = arith.constant 0 : index
    %1 = vector.load %arg1[%c1, %c0_1] : memref<2x256xf32, #tpu.memory_space<vmem>>, vector<1x256xf32>
    %c0_2 = arith.constant 0 : index
    %c0_3 = arith.constant 0 : index
    %c0_4 = arith.constant 0 : index
    %2 = vector.load %arg2[%c0_2, %c0_3, %c0_4] : memref<1x4x256xf32, #tpu.memory_space<vmem>>, vector<1x4x256xf32>
    %3 = vector.shape_cast %2 : vector<1x4x256xf32> to vector<4x256xf32>
    %cst = arith.constant 0.000000e+00 : f32
    %4 = vector.broadcast %cst : f32 to vector<4x290xf32>
    %c0_5 = arith.constant 0 : index
    %c0_6 = arith.constant 0 : index
    %5 = vector.load %arg12[%c0_5, %c0_6] : memref<4x290xf32, #tpu.memory_space<vmem>>, vector<4x290xf32>
    tpu.vector_store %arg12[%c0_5, %c0_6], %4 {strides = array<i32>} : memref<4x290xf32, #tpu.memory_space<vmem>>, vector<4x290xf32>,
    %c0_7 = arith.constant 0 : index
    %c17 = arith.constant 17 : index
    %6 = vector.load %arg12[%c0_7, %c17] : memref<4x290xf32, #tpu.memory_space<vmem>>, vector<4x256xf32>
    tpu.vector_store %arg12[%c0_7, %c17], %3 {strides = array<i32>} : memref<4x290xf32, #tpu.memory_space<vmem>>, vector<4x256xf32>,
    %c0_8 = arith.constant 0 : index
    %c0_9 = arith.constant 0 : index
    %7 = vector.load %arg12[%c0_8, %c0_9] : memref<4x290xf32, #tpu.memory_space<vmem>>, vector<4x256xf32>
    %8 = vector.broadcast %0 : vector<1x256xf32> to vector<4x256xf32>
    %9 = arith.mulf %7, %8 : vector<4x256xf32>
    %c0_10 = arith.constant 0 : index
    %c0_11 = arith.constant 0 : index
    %10 = vector.load %arg13[%c0_10, %c0_11] : memref<36x256xf32, #tpu.memory_space<vmem>>, vector<4x256xf32>
    tpu.vector_store %arg13[%c0_10, %c0_11], %9 {strides = array<i32>} : memref<36x256xf32, #tpu.memory_space<vmem>>, vector<4x256xf32>,
    %c0_12 = arith.constant 0 : index
    %c1_13 = arith.constant 1 : index
    %11 = vector.load %arg12[%c0_12, %c1_13] : memref<4x290xf32, #tpu.memory_space<vmem>>, vector<4x256xf32>
    %c4 = arith.constant 4 : index
    %c0_14 = arith.constant 0 : index
    %12 = vector.load %arg13[%c4, %c0_14] : memref<36x256xf32, #tpu.memory_space<vmem>>, vector<4x256xf32>
    tpu.vector_store %arg13[%c4, %c0_14], %11 {strides = array<i32>} : memref<36x256xf32, #tpu.memory_space<vmem>>, vector<4x256xf32>,
    %c0_15 = arith.constant 0 : index
    %c2 = arith.constant 2 : index
    %13 = vector.load %arg12[%c0_15, %c2] : memref<4x290xf32, #tpu.memory_space<vmem>>, vector<4x256xf32>
    %14 = vector.broadcast %1 : vector<1x256xf32> to vector<4x256xf32>
    %15 = arith.mulf %13, %14 : vector<4x256xf32>
    %c8 = arith.constant 8 : index
    %c0_16 = arith.constant 0 : index
    %16 = vector.load %arg13[%c8, %c0_16] : memref<36x256xf32, #tpu.memory_space<vmem>>, vector<4x256xf32>
    tpu.vector_store %arg13[%c8, %c0_16], %15 {strides = array<i32>} : memref<36x256xf32, #tpu.memory_space<vmem>>, vector<4x256xf32>,
    %c0_17 = arith.constant 0 : index
    %c16 = arith.constant 16 : index
    %17 = vector.load %arg12[%c0_17, %c16] : memref<4x290xf32, #tpu.memory_space<vmem>>, vector<4x256xf32>
    %18 = vector.broadcast %0 : vector<1x256xf32> to vector<4x256xf32>
    %19 = arith.mulf %17, %18 : vector<4x256xf32>
    %c12 = arith.constant 12 : index
    %c0_18 = arith.constant 0 : index
    %20 = vector.load %arg13[%c12, %c0_18] : memref<36x256xf32, #tpu.memory_space<vmem>>, vector<4x256xf32>
    tpu.vector_store %arg13[%c12, %c0_18], %19 {strides = array<i32>} : memref<36x256xf32, #tpu.memory_space<vmem>>, vector<4x256xf32>,
    %c0_19 = arith.constant 0 : index
    %c17_20 = arith.constant 17 : index
    %21 = vector.load %arg12[%c0_19, %c17_20] : memref<4x290xf32, #tpu.memory_space<vmem>>, vector<4x256xf32>
    %c16_21 = arith.constant 16 : index
    %c0_22 = arith.constant 0 : index
    %22 = vector.load %arg13[%c16_21, %c0_22] : memref<36x256xf32, #tpu.memory_space<vmem>>, vector<4x256xf32>
    tpu.vector_store %arg13[%c16_21, %c0_22], %21 {strides = array<i32>} : memref<36x256xf32, #tpu.memory_space<vmem>>, vector<4x256xf32>,
    %c0_23 = arith.constant 0 : index
    %c18 = arith.constant 18 : index
    %23 = vector.load %arg12[%c0_23, %c18] : memref<4x290xf32, #tpu.memory_space<vmem>>, vector<4x256xf32>
    %24 = vector.broadcast %1 : vector<1x256xf32> to vector<4x256xf32>
    %25 = arith.mulf %23, %24 : vector<4x256xf32>
    %c20 = arith.constant 20 : index
    %c0_24 = arith.constant 0 : index
    %26 = vector.load %arg13[%c20, %c0_24] : memref<36x256xf32, #tpu.memory_space<vmem>>, vector<4x256xf32>
    tpu.vector_store %arg13[%c20, %c0_24], %25 {strides = array<i32>} : memref<36x256xf32, #tpu.memory_space<vmem>>, vector<4x256xf32>,
    %c0_25 = arith.constant 0 : index
    %c32 = arith.constant 32 : index
    %27 = vector.load %arg12[%c0_25, %c32] : memref<4x290xf32, #tpu.memory_space<vmem>>, vector<4x256xf32>
    %28 = vector.broadcast %0 : vector<1x256xf32> to vector<4x256xf32>
    %29 = arith.mulf %27, %28 : vector<4x256xf32>
    %c24 = arith.constant 24 : index
    %c0_26 = arith.constant 0 : index
    %30 = vector.load %arg13[%c24, %c0_26] : memref<36x256xf32, #tpu.memory_space<vmem>>, vector<4x256xf32>
    tpu.vector_store %arg13[%c24, %c0_26], %29 {strides = array<i32>} : memref<36x256xf32, #tpu.memory_space<vmem>>, vector<4x256xf32>,
    %c0_27 = arith.constant 0 : index
    %c33 = arith.constant 33 : index
    %31 = vector.load %arg12[%c0_27, %c33] : memref<4x290xf32, #tpu.memory_space<vmem>>, vector<4x256xf32>
    %c28 = arith.constant 28 : index
    %c0_28 = arith.constant 0 : index
    %32 = vector.load %arg13[%c28, %c0_28] : memref<36x256xf32, #tpu.memory_space<vmem>>, vector<4x256xf32>
    tpu.vector_store %arg13[%c28, %c0_28], %31 {strides = array<i32>} : memref<36x256xf32, #tpu.memory_space<vmem>>, vector<4x256xf32>,
    %c0_29 = arith.constant 0 : index
    %c34 = arith.constant 34 : index
    %33 = vector.load %arg12[%c0_29, %c34] : memref<4x290xf32, #tpu.memory_space<vmem>>, vector<4x256xf32>
    %34 = vector.broadcast %1 : vector<1x256xf32> to vector<4x256xf32>
    %35 = arith.mulf %33, %34 : vector<4x256xf32>
    %c32_30 = arith.constant 32 : index
    %c0_31 = arith.constant 0 : index
    %36 = vector.load %arg13[%c32_30, %c0_31] : memref<36x256xf32, #tpu.memory_space<vmem>>, vector<4x256xf32>
    tpu.vector_store %arg13[%c32_30, %c0_31], %35 {strides = array<i32>} : memref<36x256xf32, #tpu.memory_space<vmem>>, vector<4x256xf32>,
    %c0_32 = arith.constant 0 : index
    %c0_33 = arith.constant 0 : index
    %37 = vector.load %arg3[%c0_32, %c0_33] : memref<32x36xf32, #tpu.memory_space<vmem>>, vector<32x36xf32>
    %c0_34 = arith.constant 0 : index
    %c0_35 = arith.constant 0 : index
    %38 = vector.load %arg13[%c0_34, %c0_35] : memref<36x256xf32, #tpu.memory_space<vmem>>, vector<36x256xf32>
    %cst_36 = arith.constant dense<0.000000e+00> : vector<32x256xf32>
    %39 = tpu.matmul %37, %38, %cst_36 {dimension_numbers = #tpu.dot_dimension_numbers<[1], [0], [0], [1], [0, 0, 1, 1], [], []>} : vector<32x36xf32>, vector<36x256xf32>, vector<32x256xf32> -> vector<32x256xf32>
    %c0_37 = arith.constant 0 : index
    %c0_38 = arith.constant 0 : index
    %40 = vector.load %arg4[%c0_37, %c0_38] : memref<32x1xf32, #tpu.memory_space<vmem>>, vector<32x1xf32>
    %41 = vector.broadcast %40 : vector<32x1xf32> to vector<32x256xf32>
    %42 = arith.mulf %39, %41 : vector<32x256xf32>
    %c0_39 = arith.constant 0 : index
    %c0_40 = arith.constant 0 : index
    %43 = vector.load %arg5[%c0_39, %c0_40] : memref<32x1xf32, #tpu.memory_space<vmem>>, vector<32x1xf32>
    %44 = vector.broadcast %43 : vector<32x1xf32> to vector<32x256xf32>
    %45 = arith.addf %42, %44 : vector<32x256xf32>
    %cst_41 = arith.constant 0.000000e+00 : f32
    %46 = vector.broadcast %cst_41 : f32 to vector<32x256xf32>
    %47 = arith.maximumf %45, %46 : vector<32x256xf32>
    %cst_42 = arith.constant dense<0.000000e+00> : vector<32xf32>
    %48 = vector.multi_reduction <add>, %47, %cst_42 [1] : vector<32x256xf32> to vector<32xf32>
    %49 = vector.shape_cast %48 : vector<32xf32> to vector<32x1xf32>
    %cst_43 = arith.constant 2.560000e+02 : f32
    %50 = vector.broadcast %cst_43 : f32 to vector<32x1xf32>
    %51 = arith.divf %49, %50 : vector<32x1xf32>
    %c0_44 = arith.constant 0 : index
    %c0_45 = arith.constant 0 : index
    %52 = vector.load %arg6[%c0_44, %c0_45] : memref<2x32xf32, #tpu.memory_space<vmem>>, vector<2x32xf32>
    %cst_46 = arith.constant dense<0.000000e+00> : vector<2x1xf32>
    %53 = tpu.matmul %52, %51, %cst_46 {dimension_numbers = #tpu.dot_dimension_numbers<[1], [0], [0], [1], [0, 0, 1, 1], [], []>} : vector<2x32xf32>, vector<32x1xf32>, vector<2x1xf32> -> vector<2x1xf32>
    %cst_47 = arith.constant 0.000000e+00 : f32
    %54 = vector.broadcast %cst_47 : f32 to vector<2x1xf32>
    %55 = arith.maximumf %53, %54 : vector<2x1xf32>
    %c0_48 = arith.constant 0 : index
    %c0_49 = arith.constant 0 : index
    %56 = vector.load %arg7[%c0_48, %c0_49] : memref<32x2xf32, #tpu.memory_space<vmem>>, vector<32x2xf32>
    %cst_50 = arith.constant dense<0.000000e+00> : vector<32x1xf32>
    %57 = tpu.matmul %56, %55, %cst_50 {dimension_numbers = #tpu.dot_dimension_numbers<[1], [0], [0], [1], [0, 0, 1, 1], [], []>} : vector<32x2xf32>, vector<2x1xf32>, vector<32x1xf32> -> vector<32x1xf32>
    %58 = arith.negf %57 : vector<32x1xf32>
    %59 = math.exp %58 : vector<32x1xf32>
    %cst_51 = arith.constant 1.000000e+00 : f32
    %60 = vector.broadcast %cst_51 : f32 to vector<32x1xf32>
    %61 = arith.addf %60, %59 : vector<32x1xf32>
    %62 = arith.divf %60, %61 : vector<32x1xf32>
    %63 = vector.broadcast %62 : vector<32x1xf32> to vector<32x256xf32>
    %64 = arith.mulf %47, %63 : vector<32x256xf32>
    %cst_52 = arith.constant 0.000000e+00 : f32
    %65 = vector.broadcast %cst_52 : f32 to vector<32x290xf32>
    %c0_53 = arith.constant 0 : index
    %c0_54 = arith.constant 0 : index
    %66 = vector.load %arg14[%c0_53, %c0_54] : memref<32x290xf32, #tpu.memory_space<vmem>>, vector<32x290xf32>
    tpu.vector_store %arg14[%c0_53, %c0_54], %65 {strides = array<i32>} : memref<32x290xf32, #tpu.memory_space<vmem>>, vector<32x290xf32>,
    %c0_55 = arith.constant 0 : index
    %c17_56 = arith.constant 17 : index
    %67 = vector.load %arg14[%c0_55, %c17_56] : memref<32x290xf32, #tpu.memory_space<vmem>>, vector<32x256xf32>
    tpu.vector_store %arg14[%c0_55, %c17_56], %64 {strides = array<i32>} : memref<32x290xf32, #tpu.memory_space<vmem>>, vector<32x256xf32>,
    %c0_57 = arith.constant 0 : index
    %c0_58 = arith.constant 0 : index
    %68 = vector.load %arg14[%c0_57, %c0_58] : memref<32x290xf32, #tpu.memory_space<vmem>>, vector<32x256xf32>
    %69 = vector.broadcast %0 : vector<1x256xf32> to vector<32x256xf32>
    %70 = arith.mulf %68, %69 : vector<32x256xf32>
    %c0_59 = arith.constant 0 : index
    %c0_60 = arith.constant 0 : index
    %71 = vector.load %arg15[%c0_59, %c0_60] : memref<288x256xf32, #tpu.memory_space<vmem>>, vector<32x256xf32>
    tpu.vector_store %arg15[%c0_59, %c0_60], %70 {strides = array<i32>} : memref<288x256xf32, #tpu.memory_space<vmem>>, vector<32x256xf32>,
    %c0_61 = arith.constant 0 : index
    %c1_62 = arith.constant 1 : index
    %72 = vector.load %arg14[%c0_61, %c1_62] : memref<32x290xf32, #tpu.memory_space<vmem>>, vector<32x256xf32>
    %c32_63 = arith.constant 32 : index
    %c0_64 = arith.constant 0 : index
    %73 = vector.load %arg15[%c32_63, %c0_64] : memref<288x256xf32, #tpu.memory_space<vmem>>, vector<32x256xf32>
    tpu.vector_store %arg15[%c32_63, %c0_64], %72 {strides = array<i32>} : memref<288x256xf32, #tpu.memory_space<vmem>>, vector<32x256xf32>,
    %c0_65 = arith.constant 0 : index
    %c2_66 = arith.constant 2 : index
    %74 = vector.load %arg14[%c0_65, %c2_66] : memref<32x290xf32, #tpu.memory_space<vmem>>, vector<32x256xf32>
    %75 = vector.broadcast %1 : vector<1x256xf32> to vector<32x256xf32>
    %76 = arith.mulf %74, %75 : vector<32x256xf32>
    %c64 = arith.constant 64 : index
    %c0_67 = arith.constant 0 : index
    %77 = vector.load %arg15[%c64, %c0_67] : memref<288x256xf32, #tpu.memory_space<vmem>>, vector<32x256xf32>
    tpu.vector_store %arg15[%c64, %c0_67], %76 {strides = array<i32>} : memref<288x256xf32, #tpu.memory_space<vmem>>, vector<32x256xf32>,
    %c0_68 = arith.constant 0 : index
    %c16_69 = arith.constant 16 : index
    %78 = vector.load %arg14[%c0_68, %c16_69] : memref<32x290xf32, #tpu.memory_space<vmem>>, vector<32x256xf32>
    %79 = vector.broadcast %0 : vector<1x256xf32> to vector<32x256xf32>
    %80 = arith.mulf %78, %79 : vector<32x256xf32>
    %c96 = arith.constant 96 : index
    %c0_70 = arith.constant 0 : index
    %81 = vector.load %arg15[%c96, %c0_70] : memref<288x256xf32, #tpu.memory_space<vmem>>, vector<32x256xf32>
    tpu.vector_store %arg15[%c96, %c0_70], %80 {strides = array<i32>} : memref<288x256xf32, #tpu.memory_space<vmem>>, vector<32x256xf32>,
    %c0_71 = arith.constant 0 : index
    %c17_72 = arith.constant 17 : index
    %82 = vector.load %arg14[%c0_71, %c17_72] : memref<32x290xf32, #tpu.memory_space<vmem>>, vector<32x256xf32>
    %c128 = arith.constant 128 : index
    %c0_73 = arith.constant 0 : index
    %83 = vector.load %arg15[%c128, %c0_73] : memref<288x256xf32, #tpu.memory_space<vmem>>, vector<32x256xf32>
    tpu.vector_store %arg15[%c128, %c0_73], %82 {strides = array<i32>} : memref<288x256xf32, #tpu.memory_space<vmem>>, vector<32x256xf32>,
    %c0_74 = arith.constant 0 : index
    %c18_75 = arith.constant 18 : index
    %84 = vector.load %arg14[%c0_74, %c18_75] : memref<32x290xf32, #tpu.memory_space<vmem>>, vector<32x256xf32>
    %85 = vector.broadcast %1 : vector<1x256xf32> to vector<32x256xf32>
    %86 = arith.mulf %84, %85 : vector<32x256xf32>
    %c160 = arith.constant 160 : index
    %c0_76 = arith.constant 0 : index
    %87 = vector.load %arg15[%c160, %c0_76] : memref<288x256xf32, #tpu.memory_space<vmem>>, vector<32x256xf32>
    tpu.vector_store %arg15[%c160, %c0_76], %86 {strides = array<i32>} : memref<288x256xf32, #tpu.memory_space<vmem>>, vector<32x256xf32>,
    %c0_77 = arith.constant 0 : index
    %c32_78 = arith.constant 32 : index
    %88 = vector.load %arg14[%c0_77, %c32_78] : memref<32x290xf32, #tpu.memory_space<vmem>>, vector<32x256xf32>
    %89 = vector.broadcast %0 : vector<1x256xf32> to vector<32x256xf32>
    %90 = arith.mulf %88, %89 : vector<32x256xf32>
    %c192 = arith.constant 192 : index
    %c0_79 = arith.constant 0 : index
    %91 = vector.load %arg15[%c192, %c0_79] : memref<288x256xf32, #tpu.memory_space<vmem>>, vector<32x256xf32>
    tpu.vector_store %arg15[%c192, %c0_79], %90 {strides = array<i32>} : memref<288x256xf32, #tpu.memory_space<vmem>>, vector<32x256xf32>,
    %c0_80 = arith.constant 0 : index
    %c33_81 = arith.constant 33 : index
    %92 = vector.load %arg14[%c0_80, %c33_81] : memref<32x290xf32, #tpu.memory_space<vmem>>, vector<32x256xf32>
    %c224 = arith.constant 224 : index
    %c0_82 = arith.constant 0 : index
    %93 = vector.load %arg15[%c224, %c0_82] : memref<288x256xf32, #tpu.memory_space<vmem>>, vector<32x256xf32>
    tpu.vector_store %arg15[%c224, %c0_82], %92 {strides = array<i32>} : memref<288x256xf32, #tpu.memory_space<vmem>>, vector<32x256xf32>,
    %c0_83 = arith.constant 0 : index
    %c34_84 = arith.constant 34 : index
    %94 = vector.load %arg14[%c0_83, %c34_84] : memref<32x290xf32, #tpu.memory_space<vmem>>, vector<32x256xf32>
    %95 = vector.broadcast %1 : vector<1x256xf32> to vector<32x256xf32>
    %96 = arith.mulf %94, %95 : vector<32x256xf32>
    %c256 = arith.constant 256 : index
    %c0_85 = arith.constant 0 : index
    %97 = vector.load %arg15[%c256, %c0_85] : memref<288x256xf32, #tpu.memory_space<vmem>>, vector<32x256xf32>
    tpu.vector_store %arg15[%c256, %c0_85], %96 {strides = array<i32>} : memref<288x256xf32, #tpu.memory_space<vmem>>, vector<32x256xf32>,
    %c0_86 = arith.constant 0 : index
    %c0_87 = arith.constant 0 : index
    %98 = vector.load %arg8[%c0_86, %c0_87] : memref<32x288xf32, #tpu.memory_space<vmem>>, vector<32x288xf32>
    %c0_88 = arith.constant 0 : index
    %c0_89 = arith.constant 0 : index
    %99 = vector.load %arg15[%c0_88, %c0_89] : memref<288x256xf32, #tpu.memory_space<vmem>>, vector<288x256xf32>
    %cst_90 = arith.constant dense<0.000000e+00> : vector<32x256xf32>
    %100 = tpu.matmul %98, %99, %cst_90 {dimension_numbers = #tpu.dot_dimension_numbers<[1], [0], [0], [1], [0, 0, 1, 1], [], []>} : vector<32x288xf32>, vector<288x256xf32>, vector<32x256xf32> -> vector<32x256xf32>
    %c0_91 = arith.constant 0 : index
    %c0_92 = arith.constant 0 : index
    %101 = vector.load %arg9[%c0_91, %c0_92] : memref<32x1xf32, #tpu.memory_space<vmem>>, vector<32x1xf32>
    %102 = vector.broadcast %101 : vector<32x1xf32> to vector<32x256xf32>
    %103 = arith.mulf %100, %102 : vector<32x256xf32>
    %c0_93 = arith.constant 0 : index
    %c0_94 = arith.constant 0 : index
    %104 = vector.load %arg10[%c0_93, %c0_94] : memref<32x1xf32, #tpu.memory_space<vmem>>, vector<32x1xf32>
    %105 = vector.broadcast %104 : vector<32x1xf32> to vector<32x256xf32>
    %106 = arith.addf %103, %105 : vector<32x256xf32>
    %cst_95 = arith.constant 0.000000e+00 : f32
    %107 = vector.broadcast %cst_95 : f32 to vector<32x256xf32>
    %108 = arith.maximumf %106, %107 : vector<32x256xf32>
    %c0_96 = arith.constant 0 : index
    %c0_97 = arith.constant 0 : index
    %c0_98 = arith.constant 0 : index
    %109 = vector.load %arg11[%c0_96, %c0_97, %c0_98] : memref<1x32x256xf32, #tpu.memory_space<vmem>>, vector<1x32x256xf32>
    %110 = vector.shape_cast %109 : vector<1x32x256xf32> to vector<32x256xf32>
    %111 = vector.shape_cast %108 : vector<32x256xf32> to vector<1x32x256xf32>
    tpu.vector_store %arg11[%c0_96, %c0_97, %c0_98], %111 {strides = array<i32>} : memref<1x32x256xf32, #tpu.memory_space<vmem>>, vector<1x32x256xf32>,
    return
  }
  func.func @transform_0(%arg0: i32) -> (i32, i32) {
    %c0_i32 = arith.constant 0 : i32
    %c0_i32_0 = arith.constant 0 : i32
    %c0_i32_1 = arith.constant 0 : i32
    return %c0_i32, %c0_i32_0 : i32, i32
  }
  func.func @transform_1(%arg0: i32) -> (i32, i32, i32) {
    %c0_i32 = arith.constant 0 : i32
    %c0_i32_0 = arith.constant 0 : i32
    %c0_i32_1 = arith.constant 0 : i32
    return %arg0, %c0_i32, %c0_i32_0 : i32, i32, i32
  }
  func.func @transform_2(%arg0: i32) -> (i32, i32) {
    %c0_i32 = arith.constant 0 : i32
    %c0_i32_0 = arith.constant 0 : i32
    %c0_i32_1 = arith.constant 0 : i32
    return %c0_i32, %c0_i32_0 : i32, i32
  }
  func.func @transform_3(%arg0: i32) -> (i32, i32) {
    %c0_i32 = arith.constant 0 : i32
    %c0_i32_0 = arith.constant 0 : i32
    %c0_i32_1 = arith.constant 0 : i32
    return %c0_i32, %c0_i32_0 : i32, i32
  }
  func.func @transform_4(%arg0: i32) -> (i32, i32) {
    %c0_i32 = arith.constant 0 : i32
    %c0_i32_0 = arith.constant 0 : i32
    %c0_i32_1 = arith.constant 0 : i32
    return %c0_i32, %c0_i32_0 : i32, i32
  }
  func.func @transform_5(%arg0: i32) -> (i32, i32) {
    %c0_i32 = arith.constant 0 : i32
    %c0_i32_0 = arith.constant 0 : i32
    %c0_i32_1 = arith.constant 0 : i32
    return %c0_i32, %c0_i32_0 : i32, i32
  }
  func.func @transform_6(%arg0: i32) -> (i32, i32) {
    %c0_i32 = arith.constant 0 : i32
    %c0_i32_0 = arith.constant 0 : i32
    %c0_i32_1 = arith.constant 0 : i32
    return %c0_i32, %c0_i32_0 : i32, i32
  }
  func.func @transform_7(%arg0: i32) -> (i32, i32) {
    %c0_i32 = arith.constant 0 : i32
    %c0_i32_0 = arith.constant 0 : i32
    %c0_i32_1 = arith.constant 0 : i32
    return %c0_i32, %c0_i32_0 : i32, i32
  }
  func.func @transform_8(%arg0: i32) -> (i32, i32) {
    %c0_i32 = arith.constant 0 : i32
    %c0_i32_0 = arith.constant 0 : i32
    %c0_i32_1 = arith.constant 0 : i32
    return %c0_i32, %c0_i32_0 : i32, i32
  }
  func.func @transform_9(%arg0: i32) -> (i32, i32) {
    %c0_i32 = arith.constant 0 : i32
    %c0_i32_0 = arith.constant 0 : i32
    %c0_i32_1 = arith.constant 0 : i32
    return %c0_i32, %c0_i32_0 : i32, i32
  }
  func.func @transform_10(%arg0: i32) -> (i32, i32, i32) {
    %c0_i32 = arith.constant 0 : i32
    %c0_i32_0 = arith.constant 0 : i32
    %c0_i32_1 = arith.constant 0 : i32
    return %arg0, %c0_i32, %c0_i32_0 : i32, i32, i32
  }
}

</mosaic_0001>

<bundles_post_ra>
// kernel: double_conv_attention_se_forward.1
= control target key start
LH: loop header
LB: loop body
LE: loop exit
PB: predicated region body
PF: predicated region fallthrough
CT: control target
= control target key end

     0   :  { %s2746_s13 = smov 0   ;;  %s3575_s0 = inlined_call_operand.vmem [shape: f32[2,256], index: 0, kind: input, shape index: {}]   ;;  %s3576_s1 = inlined_call_operand.vmem [shape: f32[2,4,256], index: 1, kind: input, shape index: {}]   ;;  %s3577_s2 = inlined_call_operand.vmem [shape: f32[32,36], index: 2, kind: input, shape index: {}]   ;;  %s3578_s3 = inlined_call_operand.vmem [shape: f32[32,1], index: 3, kind: input, shape index: {}]   ;;  %s3579_s4 = inlined_call_operand.vmem [shape: f32[32,1], index: 4, kind: input, shape index: {}]   ;;  %s3580_s5 = inlined_call_operand.vmem [shape: f32[2,32], index: 5, kind: input, shape index: {}]   ;;  %s3581_s6 = inlined_call_operand.vmem [shape: f32[32,2], index: 6, kind: input, shape index: {}]   ;;  %s3582_s7 = inlined_call_operand.vmem [shape: f32[32,288], index: 7, kind: input, shape index: {}]   ;;  %s3583_s8 = inlined_call_operand.vmem [shape: f32[32,1], index: 8, kind: input, shape index: {}]   ;;  %s3584_s9 = inlined_call_operand.vmem [shape: f32[32,1], index: 9, kind: input, shape index: {}]   ;;  %s3585_s10 = inlined_call_operand.vmem [shape: f32[2,32,256], index: 10, kind: output, shape index: {}]  }
   0x1 LB: > { %s2222_s14 = sadd.s32 4294967295, %s2671_s13   ;;  %p2226_p0 = scmp.ge.s32.totalorder %s2671_s13, 1  ;;  %s2671_s13 = sphi %s2746_s13, %s20_s13  }
   0x2   : > { %p312_p1 = scmp.lt.s32.totalorder %s2671_s13, 3 }
   0x4   : > { %p313_p2 = pnand %p2226_p0, %p312_p1 }
   0x5   : > { %p350_p3 = scmp.lt.s32.totalorder (!%p313_p2), %s2222_s14, 1  ;;  %v383_v0 = vlaneseq (!%p313_p2)  ;;  %v2673_v1 = vmov (!%p313_p2), 0.0   ;;  %vm365_vm0 = vcmask (!%p313_p2), 273408   ;;  %v360_v3 = vld [vmem:[%s3575_s0] ss:$2 sm:$0x3] (!%p313_p2) }
   0x6   : > { %316 = sbr.rel (%p313_p2) target bundleno = 1858 (0x742), region = 60  ;;  %364 = vst [vmem:[#allocation2] sm:$0xff] (!%p313_p2), %v2673_v1  ;;  %1046 = vst [vmem:[#allocation4] sm:$0xff] (!%p313_p2), %v2673_v1  ;;  %700 = vmatprep.mubr.f32.mxu1 (!%p313_p2), %v2673_v1  ;;  %v2231_v4 = vld [vmem:[%s3575_s0 + $0x1] ss:$2 sm:$0x3] (!%p313_p2) }
   0x7   : > { %1049 = vst [vmem:[#allocation4 + $0x18] sm:$0xff] (!%p313_p2), %v2673_v1  ;;  %1052 = vst [vmem:[#allocation4 + $0x30] sm:$0xff] (!%p313_p2), %v2673_v1  ;;  %v384_v2 = vshrl.u32 (!%p313_p2), %v383_v0, 7  ;;  %vm580_vm1 = vcmask (!%p313_p2), 277504   ;;  %s2674_s23 = smov (!%p313_p2), 17   ;;  %s2675_s24 = smov (!%p313_p2), 16  }
   0x8   : > { %1055 = vst [vmem:[#allocation4 + $0x48] sm:$0xff] (!%p313_p2), %v2673_v1  ;;  %366 = vst.msk [vmem:[#allocation2 + $0x8] sm:$0xf] (!%p313_p2), %vm365_vm0, %v2673_v1  ;;  %s2676_s25 = smov (!%p313_p2), 2   ;;  %s2677_s26 = smov (!%p313_p2), 32   ;;  %vm375_vm2 = vcmask (!%p313_p2), 1043592  }
   0x9   : > { %v385_v5 = vsub.s32 (!%p313_p2), 0, %v384_v2  ;;  %v389_v6 = vsub.s32 (!%p313_p2), 1, %v384_v2  ;;  %1048 = vst.msk [vmem:[#allocation4 + $0x10] sm:$0xff] (!%p313_p2), %vm580_vm1, %v2673_v1  ;;  %1051 = vst.msk [vmem:[#allocation4 + $0x28] sm:$0xff] (!%p313_p2), %vm580_vm1, %v2673_v1  ;;  %s2678_s27 = smov (!%p313_p2), 18   ;;  %s2679_s28 = smov (!%p313_p2), 34  }
   0xa   : > { %1054 = vst.msk [vmem:[#allocation4 + $0x40] sm:$0xff] (!%p313_p2), %vm580_vm1, %v2673_v1  ;;  %1057 = vst.msk [vmem:[#allocation4 + $0x58] sm:$0xff] (!%p313_p2), %vm580_vm1, %v2673_v1  ;;  %vm376_vm3 = vcmask (!%p313_p2), 1047556   ;;  %vm371_vm4 = vcmask (!%p313_p2), 138240   ;;  %vm379_vm5 = vcmask (!%p313_p2), 134144   ;;  %s2680_s29 = smov (!%p313_p2), 111  }
   0xb   : > { %v2781_v8 = vrot.slane (!%p313_p2), %v360_v3, %v385_v5  ;;  %v2783_v9 = vrot.slane (!%p313_p2), %v360_v3, %v389_v6  ;;  %v2785_v10 = vrot.slane (!%p313_p2), %v2231_v4, %v385_v5  ;;  %v2787_v11 = vrot.slane (!%p313_p2), %v2231_v4, %v389_v6  ;;  %vm377_vm6 = vmor (!%p313_p2), %vm376_vm3, %vm375_vm2  ;;  %s3586_s30 = smov (!%p313_p2), 95   ;;  %s2682_s11 = smov (!%p313_p2), 127   ;;  %v726_v62 = vld [vmem:[%s3578_s3 + $0x8] sm:$0xff] (!%p313_p2)  ;;  %v725_v63 = vld [vmem:[%s3578_s3] sm:$0xff] (!%p313_p2) }
   0xc   : > { %vm460_vm7 = vcmask (!%p313_p2), 130048   ;;  %s3588_s12 = smov (!%p313_p2), 96   ;;  %vm433_vm8 = vcmask (!%p313_p2), 15360   ;;  %s3596_s15 = smov (!%p313_p2), 126   ;;  %vm506_vm9 = vcmask (!%p313_p2), 146432   ;;  %vm534_vm10 = vcmask (!%p313_p2), 261120  }
   0xd   : > { %s3605_s14 = smov (!%p350_p3, %s2222_s14), 1  ;;  %v391_v12 = vcombine.low %v2781_v8, %v2783_v9  ;;  %v429_v13 = vcombine.low %v2785_v10, %v2787_v11  ;;  %s3592_s16 = smov 112   ;;  %v2688_v0 = vmov 0   ;;  %v757_v2 = vld [vmem:[%s3579_s4] sm:$0xff]  ;;  %v758_v3 = vld [vmem:[%s3579_s4 + $0x8] sm:$0xff]  ;;  %v727_v4 = vld [vmem:[%s3578_s3 + $0x10] sm:$0xff] }
   0xe   : > { %s2254_s19 = sshll.u32 %s3605_s14, 3  ;;  %s3590_s17 = smov 110   ;;  %2406 = vset.pattern.permute.xlu1 %v2688_v0  ;;  %2405 = vset.pattern.permute.xlu0 %v2688_v0  ;;  %v728_v5 = vld [vmem:[%s3578_s3 + $0x18] sm:$0xff]  ;;  %v759_v6 = vld [vmem:[%s3579_s4 + $0x10] sm:$0xff]  ;;  %vm411_vm11 = vcmask 1039360   ;;  %vm568_vm12 = vcmask 777216  }
   0xf   : > { %s354_s22 = scalar_lea.vmem %s3576_s1, %s2254_s19  ;;  %457 = vrot.lane.b32.xlu1 %v391_v12, %s2675_s24  ;;  %s3594_s18 = smov 94   ;;  %vm494_vm13 = vcmask 908288   ;;  %vm522_vm14 = vcmask 900096   ;;  %vm448_vm15 = vcmask 1031168   ;;  %vm476_vm0 = vcmask 916480  }
  0x10   : > { %v363_v7 = vld [vmem:[%s354_s22] sm:$0xff]  ;;  %vm549_vm2 = vcmask 785408   ;;  %vm595_vm3 = vcmask 769024  }
  0x11   : > { %368 = vrot.lane.b32.xlu0 %v363_v7, %s2674_s23  ;;  %v760_v7 = vld [vmem:[%s3579_s4 + $0x18] sm:$0xff] }
  0x13   : > { %531 = vrot.lane.b32.xlu1 %v391_v12, %s2677_s26 }
  0x15   : > { %430 = vrot.lane.b32.xlu0 %v429_v13, %s2676_s25 }
  0x17   : > { %577 = vrot.lane.b32.xlu1 %v429_v13, %s2679_s28 }
  0x19   : > { %503 = vrot.lane.b32.xlu0 %v429_v13, %s2678_s27 }
  0x81   : > { %v458_v17 = vpop.permute.xlu1 %457 }
  0x82   : > { %v459_v26 = vrot.slane %v458_v17, 4 }
  0x83   : > { %v369_v14 = vpop.permute.xlu0 %368 }
  0x84   : > { %v370_v15 = vrot.slane %v369_v14, 4  ;;  %v461_v32 = vsel %vm460_vm7, %v459_v26, %v458_v17 }
  0x85   : > { %v532_v18 = vpop.permute.xlu1 %531 }
  0x86   : > { %v372_v16 = vsel %vm371_vm4, %v370_v15, %v369_v14  ;;  %380 = vst.msk [vmem:[#allocation2 + $0x8] sm:$0xf] %vm379_vm5, %v370_v15  ;;  %v533_v21 = vrot.slane %v532_v18, 4  ;;  %vm629_vm5 = vcmask 1043456  }
  0x87   : > { %378 = vst.msk [vmem:[#allocation2] sm:$0xff] %vm377_vm6, %v372_v16  ;;  %v431_v23 = vpop.permute.xlu0 %430  ;;  %vm616_vm6 = vcmask 293888  }
  0x88   : > { %v432_v27 = vrot.slane %v431_v23, 4  ;;  %v535_v46 = vsel %vm534_vm10, %v533_v21, %v532_v18 }
  0x89   : > { %v578_v48 = vpop.permute.xlu1 %577 }
  0x8a   : > { %v434_v35 = vsel %vm433_vm8, %v432_v27, %v431_v23  ;;  %v579_v52 = vrot.slane %v578_v48, 4 }
  0x8b   : > { %v504_v33 = vpop.permute.xlu0 %503 }
  0x8c   : > { %v505_v36 = vrot.slane %v504_v33, 4  ;;  %v581_v55 = vsel %vm580_vm1, %v579_v52, %v578_v48 }
  0x8d   : > { %v484_v19 = vld [vmem:[#allocation2 + $0x8] sm:$0xf] }
  0x8e   : > { %v2800_v20 = vld [vmem:[#allocation2] sm:$0xff]  ;;  %492 = vrot.lane.b32.xlu0 %v484_v19, %s2680_s29  ;;  %v530_v22 = vld [vmem:[#allocation2 + $0x8] sm:$0xf]  ;;  %v507_v43 = vsel %vm506_vm9, %v505_v36, %v504_v33 }
  0x8f   : > { %564 = vrot.lane.b32.xlu1 %v2800_v20, %s3586_s30  ;;  %v393_v24 = vmul.f32 %v2800_v20, %v391_v12  ;;  %v539_v25 = vmul.f32 %v533_v21, %v530_v22  ;;  %v2647_v28 = vld [vmem:[#allocation2 + $0x8] ss:$0 sps:$4 sm:$0xff]   ;;  %v464_v37 = vmul.f32 %v2800_v20, %v461_v32  ;;  %v437_v38 = vmul.f32 %v2800_v20, %v434_v35 }
  0x90   : > { %v419_v30 = vld [vmem:[#allocation2 + $0x8] sm:$0xf]  ;;  %v560_v40 = vcombine.low %v2800_v20, %v2800_v20  ;;  %v487_v42 = vcombine.high %v2800_v20, %v2800_v20  ;;  %v510_v45 = vmul.f32 %v2800_v20, %v507_v43  ;;  %v538_v50 = vmul.f32 %v2800_v20, %v535_v46 }
  0x91   : > { %v395_v29 = vcombine.high %v393_v24, %v393_v24  ;;  %397 = vst [vmem:[#allocation3] sm:$0xf] %v393_v24  ;;  %v2648_v31 = vld [vmem:[#allocation2 + $0x8] ss:$0 sps:$4 sm:$0xff]   ;;  %v438_v34 = vmul.f32 %v432_v27, %v419_v30  ;;  %v441_v49 = vcombine.high %v437_v38, %v437_v38  ;;  %v468_v53 = vcombine.low %v464_v37, %v464_v37 }
  0x92   : > { %407 = vrot.lane.b32.xlu0 %v2800_v20, %s2682_s11  ;;  %v502_v39 = vld [vmem:[#allocation2 + $0x8] sm:$0xf]  ;;  %v514_v56 = vcombine.low %v510_v45, %v510_v45  ;;  %v584_v57 = vmul.f32 %v581_v55, %v2800_v20  ;;  %v542_v58 = vcombine.high %v538_v50, %v538_v50 }
  0x93   : > { %488 = vrot.lane.b32.xlu1 %v2800_v20, %s2680_s29  ;;  %398 = vst [vmem:[#allocation3 + $0x8] sm:$0xf] %v395_v29  ;;  %v511_v41 = vmul.f32 %v505_v36, %v502_v39  ;;  %v456_v47 = vld [vmem:[#allocation2 + $0x8] sm:$0xf] }
  0x94   : > { %v465_v51 = vmul.f32 %v459_v26, %v456_v47  ;;  %v588_v59 = vcombine.high %v584_v57, %v584_v57  ;;  %v576_v60 = vld [vmem:[#allocation2 + $0x8] sm:$0xf] }
  0x95   : > { %v515_v44 = vcombine.low %v511_v41, %v511_v41  ;;  %v585_v61 = vmul.f32 %v579_v52, %v576_v60 }
  0x96   : > { %547 = vrot.lane.b32.xlu0 %v539_v25, %s3588_s12  ;;  %v469_v54 = vcombine.low %v465_v51, %v465_v51 }
  0x97   : > { %409 = vrot.lane.b32.xlu1 %v2647_v28, %s2682_s11 }
  0x9a   : > { %566 = vrot.lane.b32.xlu0 %v2648_v31, %s3586_s30 }
  0x9b   : > { %446 = vrot.lane.b32.xlu1 %v438_v34, %s3596_s15 }
  0x9e   : > { %472 = vrot.lane.b32.xlu0 %v464_v37, %s3592_s16 }
  0x9f   : > { %442 = vrot.lane.b32.xlu1 %v437_v38, %s3596_s15 }
  0xa2   : > { %405 = vrot.lane.b32.xlu0 %v560_v40, %s2682_s11 }
  0xa3   : > { %490 = vrot.lane.b32.xlu1 %v487_v42, %s2680_s29 }
  0xa6   : > { %520 = vrot.lane.b32.xlu0 %v515_v44, %s3590_s17 }
  0xa7   : > { %518 = vrot.lane.b32.xlu1 %v510_v45, %s3590_s17 }
  0xaa   : > { %444 = vrot.lane.b32.xlu0 %v441_v49, %s3596_s15  ;;  %s2255_s15 = sshll.u32 %s3605_s14, 6 }
  0xab   : > { %543 = vrot.lane.b32.xlu1 %v538_v50, %s3588_s12 }
  0xae   : > { %470 = vrot.lane.b32.xlu0 %v468_v53, %s3592_s16 }
  0xaf   : > { %474 = vrot.lane.b32.xlu1 %v469_v54, %s3592_s16 }
  0xb2   : > { %516 = vrot.lane.b32.xlu0 %v514_v56, %s3590_s17 }
  0xb3   : > { %545 = vrot.lane.b32.xlu1 %v542_v58, %s3588_s12 }
  0xb6   : > { %562 = vrot.lane.b32.xlu0 %v560_v40, %s3586_s30 }
  0xb7   : > { %591 = vrot.lane.b32.xlu1 %v588_v59, %s3594_s18 }
  0xba   : > { %593 = vrot.lane.b32.xlu0 %v585_v61, %s3594_s18 }
  0xbb   : > { %589 = vrot.lane.b32.xlu1 %v584_v57, %s3594_s18  ;;  %s3562_s18 = scalar_lea.vmem %s3585_s10, %s2255_s15 }
  0xbe   : > { %731 = vperm.xlu0 %2405, %v725_v63  }
  0xbf   : > { %736 = vperm.xlu1 %2406, %v726_v62  }
  0xc2   : > { %768 = vperm.xlu0 %2405, %v758_v3   ;;  %v602_v3 = vld [vmem:[%s3577_s2] sm:$0xff] }
  0xc3   : > { %763 = vperm.xlu1 %2406, %v757_v2  }
  0xc6   : > { %746 = vperm.xlu0 %2405, %v728_v5   ;;  %v604_v5 = vld [vmem:[%s3577_s2 + $0x10] sm:$0xff] }
  0xc7   : > { %741 = vperm.xlu1 %2406, %v727_v4   ;;  %v603_v4 = vld [vmem:[%s3577_s2 + $0x8] sm:$0xff] }
  0xca   : > { %778 = vperm.xlu0 %2405, %v760_v7  }
  0xcb   : > { %773 = vperm.xlu1 %2406, %v759_v6   ;;  %v605_v6 = vld [vmem:[%s3577_s2 + $0x18] sm:$0xff] }
 0x100   : > { %v493_v12 = vpop.permute.xlu0 %492 }
 0x101   : > { %v565_v13 = vpop.permute.xlu1 %564 }
 0x104   : > { %v408_v14 = vpop.permute.xlu0 %407 }
 0x105   : > { %v489_v15 = vpop.permute.xlu1 %488 }
 0x108   : > { %v548_v16 = vpop.permute.xlu0 %547 }
 0x109   : > { %v410_v17 = vpop.permute.xlu1 %409 }
 0x10a   : > { %v413_v18 = vsel %vm411_vm11, %v408_v14, %v410_v17 }
 0x10b   : > { %417 = vst [vmem:[#allocation3 + $0x8] sm:$0xf0] %v413_v18 }
 0x10c   : > { %v567_v19 = vpop.permute.xlu0 %566 }
 0x10d   : > { %v570_v20 = vsel %vm568_vm12, %v565_v13, %v567_v19  ;;  %v447_v21 = vpop.permute.xlu1 %446 }
 0x10e   : > { %574 = vst [vmem:[#allocation3 + $0x38] sm:$0xf0] %v570_v20 }
 0x110   : > { %v473_v22 = vpop.permute.xlu0 %472 }
 0x111   : > { %v443_v23 = vpop.permute.xlu1 %442 }
 0x112   : > { %v607_v49 = vld [vmem:[#allocation3 + $0x8] sm:$0xff] }
 0x114   : > { %v406_v24 = vpop.permute.xlu0 %405 }
 0x115   : > { %v412_v25 = vsel %vm411_vm11, %v406_v24, %v408_v14  ;;  %v491_v26 = vpop.permute.xlu1 %490 }
 0x116   : > { %416 = vst [vmem:[#allocation3] sm:$0xf0] %v412_v25  ;;  %v495_v27 = vsel %vm494_vm13, %v489_v15, %v491_v26  ;;  %v496_v28 = vsel %vm494_vm13, %v491_v26, %v493_v12 }
 0x117   : > { %499 = vst [vmem:[#allocation3 + $0x20] sm:$0xf] %v495_v27  ;;  %500 = vst [vmem:[#allocation3 + $0x28] sm:$0xf] %v496_v28 }
 0x118   : > { %v521_v29 = vpop.permute.xlu0 %520 }
 0x119   : > { %v519_v30 = vpop.permute.xlu1 %518 }
 0x11a   : > { %v524_v31 = vsel %vm522_vm14, %v519_v30, %v521_v29 }
 0x11b   : > { %528 = vst [vmem:[#allocation3 + $0x28] sm:$0xf0] %v524_v31 }
 0x11c   : > { %v445_v32 = vpop.permute.xlu0 %444 }
 0x11d   : > { %v449_v33 = vsel %vm448_vm15, %v443_v23, %v445_v32  ;;  %v450_v34 = vsel %vm448_vm15, %v445_v32, %v447_v21  ;;  %v544_v35 = vpop.permute.xlu1 %543  ;;  %v606_v52 = vld [vmem:[#allocation3] sm:$0xff] }
 0x11e   : > { %453 = vst [vmem:[#allocation3 + $0x10] sm:$0xf] %v449_v33  ;;  %454 = vst [vmem:[#allocation3 + $0x18] sm:$0xf] %v450_v34 }
 0x120   : > { %v471_v36 = vpop.permute.xlu0 %470 }
 0x121   : > { %v477_v37 = vsel %vm476_vm0, %v471_v36, %v473_v22  ;;  %v475_v38 = vpop.permute.xlu1 %474 }
 0x122   : > { %481 = vst [vmem:[#allocation3 + $0x10] sm:$0xf0] %v477_v37  ;;  %v478_v39 = vsel %vm476_vm0, %v473_v22, %v475_v38  ;;  %v611_v58 = vld [vmem:[#allocation3 + $0x28] sm:$0xff] }
 0x123   : > { %482 = vst [vmem:[#allocation3 + $0x18] sm:$0xf0] %v478_v39 }
 0x124   : > { %v517_v40 = vpop.permute.xlu0 %516 }
 0x125   : > { %v523_v41 = vsel %vm522_vm14, %v517_v40, %v519_v30  ;;  %v546_v42 = vpop.permute.xlu1 %545 }
 0x126   : > { %527 = vst [vmem:[#allocation3 + $0x20] sm:$0xf0] %v523_v41  ;;  %v550_v43 = vsel %vm549_vm2, %v544_v35, %v546_v42  ;;  %v551_v44 = vsel %vm549_vm2, %v546_v42, %v548_v16 }
 0x127   : > { %554 = vst [vmem:[#allocation3 + $0x30] sm:$0xf] %v550_v43  ;;  %555 = vst [vmem:[#allocation3 + $0x38] sm:$0xf] %v551_v44 }
 0x128   : > { %v563_v45 = vpop.permute.xlu0 %562 }
 0x129   : > { %v569_v46 = vsel %vm568_vm12, %v563_v45, %v565_v13  ;;  %v592_v47 = vpop.permute.xlu1 %591  ;;  %v608_v48 = vld [vmem:[#allocation3 + $0x10] sm:$0xff] }
 0x12a   : > { %573 = vst [vmem:[#allocation3 + $0x30] sm:$0xf0] %v569_v46  ;;  %v609_v50 = vld [vmem:[#allocation3 + $0x18] sm:$0xff]  ;;  %v2287_v54 = vpack.c.bf16 %v608_v48, %v606_v52 }
 0x12b   : > { %v2285_v51 = vpack.c.bf16 %v609_v50, %v607_v49 }
 0x12c   : > { %v594_v53 = vpop.permute.xlu0 %593 }
 0x12d   : > { %v597_v55 = vsel %vm595_vm3, %v592_v47, %v594_v53  ;;  %v590_v56 = vpop.permute.xlu1 %589  ;;  %2286 = vmatprep.subr.bf16.mxu1 %v2285_v51  ;;  %v610_v61 = vld [vmem:[#allocation3 + $0x20] sm:$0xff] }
 0x12e   : > { %601 = vst [vmem:[#allocation3 + $0x48] sm:$0xf] %v597_v55  ;;  %v596_v57 = vsel %vm595_vm3, %v590_v56, %v592_v47  ;;  %2288 = vmatpush1.bf16.msra.mxu1 %v2287_v54  ;;  %v613_v59 = vld [vmem:[#allocation3 + $0x38] sm:$0xff]  ;;  %v2689_v55 = vmov 0.0|0.0  }
 0x12f   : > { %600 = vst [vmem:[#allocation3 + $0x40] sm:$0xf] %v596_v57  ;;  %v2289_v60 = vpack.c.bf16 %v613_v59, %v611_v58 }
 0x131   : > { %2290 = vmatprep.subr.bf16.mxu1 %v2289_v60  ;;  %v612_v62 = vld [vmem:[#allocation3 + $0x30] sm:$0xff] }
 0x132   : > { %v2291_v63 = vpack.c.bf16 %v612_v62, %v610_v61 }
 0x134   : > { %2292 = vmatpush1.bf16.msra.mxu1 %v2291_v63 }
 0x135   : > { %v615_v0 = vld [vmem:[#allocation3 + $0x48] sm:$0xf] }
 0x136   : > { %2232 = vmatprep.subr.msk.mxu1 %vm629_vm5, %v615_v0  ;;  %v614_v2 = vld [vmem:[#allocation3 + $0x40] sm:$0xf] }
 0x138   : > { %2233 = vmatpush1.msk.msra.mxu1 %vm629_vm5, %v614_v2  ;;  %vm2690_vm5 = vmmov 0  }
 0x139   : > { %2234 = vmatmul.mubr.msk.f32.vlgmr.msra.gmra.mrb[0].mxu1 %vm616_vm6, %v602_v3  ;;  %2293 = vmatprep.subr.bf16.mxu1 %v2689_v55  ;;  %v814_v3 = vld [vmem:[%s3580_s5] sm:$0x3] }
 0x13a   : > { %706 = vmatprep.mubr.f32.mxu1 %v2673_v1 }
 0x13d   : > { %2235 = vmatmul.mubr.msk.f32.gmra.mrb[2].mxu1 %vm616_vm6, %v603_v4  ;;  %v732_v12 = vpop.permute.xlu0 %731  ;;  %v889_v4 = vld [vmem:[%s3581_s6] sm:$0xff] }
 0x13e   : > { %712 = vmatprep.mubr.f32.mxu1 %v2673_v1  ;;  %v737_v7 = vpop.permute.xlu1 %736 }
 0x141   : > { %2236 = vmatmul.mubr.msk.f32.gmra.mrb[4].mxu1 %vm616_vm6, %v604_v5  ;;  %v769_v17 = vpop.permute.xlu0 %768 }
 0x142   : > { %718 = vmatprep.mubr.f32.mxu1 %v2673_v1  ;;  %v764_v13 = vpop.permute.xlu1 %763 }
 0x145   : > { %2237 = vmatmul.mubr.msk.f32.gmra.mrb[6].mxu1 %vm616_vm6, %v605_v6  ;;  %v747_v29 = vpop.permute.xlu0 %746  ;;  %vm905_vm6 = vcmask 1041408  }
 0x146   : > { %v742_v20 = vpop.permute.xlu1 %741  ;;  %2274 = vmatprep.mubr.msk.f32.mxu1 %vm2690_vm5, %v2673_v1  ;;  %vm1098_vm5 = vcmask 1047688  }
 0x149   : > { %v779_v46 = vpop.permute.xlu0 %778 }
 0x14a   : > { %v774_v36 = vpop.permute.xlu1 %773 }
 0x20c   : > { %v702_v14 = vpop.f32.mrb[0].mxu1 }
 0x20d   : > { %v749_v15 = vmul.f32 %v732_v12, %v702_v14  ;;  %v704_v16 = vpop.f32.mrb[1].mxu1  ;;  %v892_v14 = vld [vmem:[%s3581_s6 + $0x18] sm:$0xff] }
 0x20e   : > { %v750_v18 = vmul.f32 %v732_v12, %v704_v16  ;;  %v890_v12 = vld [vmem:[%s3581_s6 + $0x8] sm:$0xff] }
 0x20f   : > { %v2899_v19 = vadd.f32 %v764_v13, %v749_v15 }
 0x210   : > { %v2901_v21 = vadd.f32 %v764_v13, %v750_v18  ;;  %v708_v22 = vpop.f32.mrb[2].mxu1  ;;  %v891_v13 = vld [vmem:[%s3581_s6 + $0x10] sm:$0xff] }
 0x211   : > { %v789_v23 = vmax.f32 %v2899_v19, 0.0  ;;  %v751_v24 = vmul.f32 %v737_v7, %v708_v22  ;;  %v710_v25 = vpop.f32.mrb[3].mxu1 }
 0x212   : > { %v790_v26 = vmax.f32 %v2901_v21, 0.0  ;;  %v752_v27 = vmul.f32 %v737_v7, %v710_v25 }
 0x213   : > { %v2905_v28 = vadd.f32 %v769_v17, %v751_v24 }
 0x214   : > { %v2907_v30 = vadd.f32 %v769_v17, %v752_v27  ;;  %v714_v31 = vpop.f32.mrb[4].mxu1  ;;  %v797_v32 = vadd.f32 %v790_v26, %v789_v23 }
 0x215   : > { %v791_v33 = vmax.f32 %v2905_v28, 0.0  ;;  %v753_v34 = vmul.f32 %v742_v20, %v714_v31  ;;  %v716_v35 = vpop.f32.mrb[5].mxu1 }
 0x216   : > { %v792_v37 = vmax.f32 %v2907_v30, 0.0  ;;  %v754_v38 = vmul.f32 %v742_v20, %v716_v35  ;;  %798 = vadd.xlane.f32.xlu1 %v797_v32 }
 0x217   : > { %v2915_v39 = vadd.f32 %v774_v36, %v753_v34 }
 0x218   : > { %v2917_v40 = vadd.f32 %v774_v36, %v754_v38  ;;  %v720_v41 = vpop.f32.mrb[6].mxu1  ;;  %v800_v42 = vadd.f32 %v792_v37, %v791_v33 }
 0x219   : > { %v793_v43 = vmax.f32 %v2915_v39, 0.0  ;;  %v755_v44 = vmul.f32 %v747_v29, %v720_v41  ;;  %v722_v45 = vpop.f32.mrb[7].mxu1 }
 0x21a   : > { %v794_v47 = vmax.f32 %v2917_v40, 0.0  ;;  %v756_v48 = vmul.f32 %v747_v29, %v722_v45  ;;  %801 = vadd.xlane.f32.xlu0 %v800_v42 }
 0x21b   : > { %v2925_v49 = vadd.f32 %v779_v46, %v755_v44 }
 0x21c   : > { %v2927_v50 = vadd.f32 %v779_v46, %v756_v48  ;;  %v803_v51 = vadd.f32 %v794_v47, %v793_v43 }
 0x21d   : > { %v795_v52 = vmax.f32 %v2925_v49, 0.0 }
 0x21e   : > { %v796_v53 = vmax.f32 %v2927_v50, 0.0  ;;  %804 = vadd.xlane.f32.xlu0 %v803_v51 }
 0x220   : > { %v806_v54 = vadd.f32 %v796_v53, %v795_v52 }
 0x222   : > { %807 = vadd.xlane.f32.xlu1 %v806_v54 }
 0x2a3   : > { %v799_v56 = vpop.xlane.xlu1 %798 }
 0x2a4   : > { %v810_v58 = vmul.f32 0.00390625, %v799_v56 }
 0x2a7   : > { %v802_v57 = vpop.xlane.xlu0 %801 }
 0x2a8   : > { %v811_v59 = vmul.f32 0.00390625, %v802_v57 }
 0x2aa   : > { %v2294_v60 = vpack.c.bf16 %v811_v59, %v810_v58 }
 0x2ab   : > { %v805_v61 = vpop.xlane.xlu0 %804 }
 0x2ac   : > { %2295 = vmatpush3.bf16.msra.mxu1 %v2294_v60  ;;  %v812_v63 = vmul.f32 0.00390625, %v805_v61 }
 0x2ad   : > { %2296 = vmatprep.subr.bf16.mxu1 %v2689_v55 }
 0x2af   : > { %v808_v62 = vpop.xlane.xlu1 %807 }
 0x2b0   : > { %v813_v0 = vmul.f32 0.00390625, %v808_v62 }
 0x2b2   : > { %v2297_v2 = vpack.c.bf16 %v813_v0, %v812_v63 }
 0x2b4   : > { %2298 = vmatpush3.bf16.msra.mxu1 %v2297_v2 }
 0x2b7   : > { %2275 = vmatmul.mubr.msk.f32.vlgmr.msra.gmra.mrb[8].mxu1 %vm534_vm10, %v814_v3 }
 0x2b8   : > { %2279 = vmatprep.mubr.msk.f32.mxu1 %vm433_vm8, %v889_v4 }
 0x38a   : > { %v884_v5 = vpop.f32.mrb[8].mxu1 }
 0x38b   : > { %v888_v6 = vmax.f32 %v884_v5, 0.0  ;;  %v2276_v7 = vpop.f32.mrb[9].mxu1 }
 0x38d   : > { %2277 = vmatprep.subr.msk.mxu1 %vm905_vm6, %v888_v6 }
 0x38e   : > { %2278 = vmatpush3.msk.msra.mxu1 %vm905_vm6, %v888_v6 }
 0x38f   : > { %2280 = vmatmul.mubr.msk.f32.vlgmr.msra.gmra.mrb[10].mxu1 %vm433_vm8, %v890_v12 }
 0x390   : > { %2282 = vmatprep.mubr.msk.f32.mxu1 %vm433_vm8, %v891_v13 }
 0x393   : > { %2283 = vmatmul.mubr.msk.f32.gmra.mrb[12].mxu1 %vm433_vm8, %v892_v14 }
 0x394   : > { %2062 = vmatprep.mubr.f32.mxu1 %v2673_v1 }
 0x462   : > { %v2281_v15 = vpop.f32.mrb[10].mxu1 }
 0x463   : > { %v2245_v16 = vmul.f32 -1.442695, %v2281_v15  ;;  %v975_v17 = vpop.f32.mrb[11].mxu1 }
 0x464   : > { %v2244_v18 = vmul.f32 -1.442695, %v975_v17 }
 0x465   : > { %2649 = vpow2.f32 %v2245_v16 }
 0x466   : > { %2651 = vpow2.f32 %v2244_v18  ;;  %v2284_v20 = vpop.f32.mrb[12].mxu1 }
 0x467   : > { %v2247_v22 = vmul.f32 -1.442695, %v2284_v20  ;;  %v985_v24 = vpop.f32.mrb[13].mxu1 }
 0x468   : > { %v2246_v25 = vmul.f32 -1.442695, %v985_v24 }
 0x469   : > { %2653 = vpow2.f32 %v2247_v22 }
 0x46a   : > { %2655 = vpow2.f32 %v2246_v25 }
 0x46f   : > { %v2650_v27 = vpop.eup %2649 }
 0x470   : > { %v2652_v29 = vpop.eup %2651  ;;  %v1007_v31 = vadd.f32 1.0, %v2650_v27 }
 0x471   : > { %v1006_v32 = vadd.f32 1.0, %v2652_v29 }
 0x472   : > { %2657 = vrcp.f32 %v1007_v31 }
 0x473   : > { %v2654_v34 = vpop.eup %2653  ;;  %2659 = vrcp.f32 %v1006_v32 }
 0x474   : > { %v2656_v35 = vpop.eup %2655  ;;  %v1009_v36 = vadd.f32 1.0, %v2654_v34 }
 0x475   : > { %v1008_v38 = vadd.f32 1.0, %v2656_v35 }
 0x476   : > { %2661 = vrcp.f32 %v1009_v36 }
 0x477   : > { %2663 = vrcp.f32 %v1008_v38 }
 0x47c   : > { %v2658_v41 = vpop.eup %2657 }
 0x47d   : > { %v2660_v42 = vpop.eup %2659  ;;  %1025 = vperm.xlu1 %2406, %v2658_v41  }
 0x47e   : > { %1020 = vperm.xlu0 %2405, %v2660_v42  }
 0x480   : > { %v2662_v44 = vpop.eup %2661 }
 0x481   : > { %v2664_v45 = vpop.eup %2663 }
 0x482   : > { %1035 = vperm.xlu0 %2405, %v2662_v44   ;;  %1030 = vperm.xlu1 %2406, %v2664_v45  }
 0x4fc   : > { %v1026_v46 = vpop.permute.xlu1 %1025 }
 0x4fd   : > { %v1040_v48 = vmul.f32 %v1026_v46, %v791_v33  ;;  %v1041_v51 = vmul.f32 %v1026_v46, %v792_v37  ;;  %v1021_v54 = vpop.permute.xlu0 %1020 }
 0x4fe   : > { %v1038_v55 = vmul.f32 %v1021_v54, %v789_v23  ;;  %v1039_v56 = vmul.f32 %v1021_v54, %v790_v26 }
 0x4ff   : > { %1072 = vrot.lane.b32.xlu0 %v1041_v51, %s2674_s23  ;;  %1070 = vrot.lane.b32.xlu1 %v1040_v48, %s2674_s23 }
 0x501   : > { %v1036_v57 = vpop.permute.xlu0 %1035  ;;  %v1031_v33 = vpop.permute.xlu1 %1030 }
 0x502   : > { %v1044_v28 = vmul.f32 %v1036_v57, %v795_v52  ;;  %v1045_v30 = vmul.f32 %v1036_v57, %v796_v53  ;;  %v1042_v19 = vmul.f32 %v1031_v33, %v793_v43  ;;  %v1043_v21 = vmul.f32 %v1031_v33, %v794_v47 }
 0x503   : > { %1068 = vrot.lane.b32.xlu0 %v1039_v56, %s2674_s23  ;;  %1066 = vrot.lane.b32.xlu1 %v1038_v55, %s2674_s23 }
 0x507   : > { %1080 = vrot.lane.b32.xlu0 %v1045_v30, %s2674_s23  ;;  %1078 = vrot.lane.b32.xlu1 %v1044_v28, %s2674_s23 }
 0x50b   : > { %1076 = vrot.lane.b32.xlu0 %v1043_v21, %s2674_s23  ;;  %1074 = vrot.lane.b32.xlu1 %v1042_v19, %s2674_s23  ;;  %s3598_s23 = smov 126  }
 0x50f   : > { %1223 = vrot.lane.b32.xlu0 %v2787_v11, %s2676_s25  ;;  %1221 = vrot.lane.b32.xlu1 %v2785_v10, %s2676_s25  ;;  %s3600_s25 = smov 110  }
 0x513   : > { %1315 = vrot.lane.b32.xlu0 %v2783_v9, %s2675_s24  ;;  %1313 = vrot.lane.b32.xlu1 %v2781_v8, %s2675_s24  ;;  %s3599_s24 = smov 112  }
 0x517   : > { %1479 = vrot.lane.b32.xlu0 %v2787_v11, %s2678_s27  ;;  %1477 = vrot.lane.b32.xlu1 %v2785_v10, %s2678_s27  ;;  %s3602_s27 = smov 95  }
 0x51b   : > { %1571 = vrot.lane.b32.xlu0 %v2783_v9, %s2677_s26  ;;  %1569 = vrot.lane.b32.xlu1 %v2781_v8, %s2677_s26  ;;  %s3601_s26 = smov 96  }
 0x51f   : > { %1735 = vrot.lane.b32.xlu0 %v2787_v11, %s2679_s28  ;;  %1733 = vrot.lane.b32.xlu1 %v2785_v10, %s2679_s28  ;;  %s3603_s28 = smov 94  }
 0x571   : > { %v1073_v23 = vpop.permute.xlu0 %1072  ;;  %v1071_v26 = vpop.permute.xlu1 %1070 }
 0x572   : > { %1104 = vst.msk [vmem:[#allocation4 + $0x28] sm:$0xff] %vm371_vm4, %v1073_v23  ;;  %v3007_v37 = vsel %vm371_vm4, %v1071_v26, %v1073_v23 }
 0x573   : > { %1102 = vst.msk [vmem:[#allocation4 + $0x18] sm:$0xff] %vm1098_vm5, %v1071_v26  ;;  %v1124_v11 = vmul.f32 %v3007_v37, %v2783_v9 }
 0x575   : > { %v1069_v39 = vpop.permute.xlu0 %1068  ;;  %v1067_v40 = vpop.permute.xlu1 %1066 }
 0x576   : > { %1101 = vst.msk [vmem:[#allocation4 + $0x10] sm:$0xff] %vm371_vm4, %v1069_v39  ;;  %v3012_v43 = vsel %vm371_vm4, %v1067_v40, %v1069_v39 }
 0x577   : > { %1099 = vst.msk [vmem:[#allocation4] sm:$0xff] %vm1098_vm5, %v1067_v40  ;;  %v1122_v10 = vmul.f32 %v3012_v43, %v2783_v9 }
 0x579   : > { %v1081_v47 = vpop.permute.xlu0 %1080  ;;  %v1079_v49 = vpop.permute.xlu1 %1078  ;;  %v3019_v50 = vld [vmem:[#allocation4 + $0x28] sm:$0xff]  ;;  %v2299_v52 = vpack.c.bf16 %v1124_v11, %v1122_v10 }
 0x57a   : > { %1110 = vst.msk [vmem:[#allocation4 + $0x58] sm:$0xff] %vm371_vm4, %v1081_v47  ;;  %v3023_v53 = vsel %vm371_vm4, %v1079_v49, %v1081_v47  ;;  %v3028_v58 = vpack.i.bf16 %v3019_v50, %v3007_v37  ;;  %v3030_v59 = vld [vmem:[#allocation4 + $0x18] sm:$0xff] }
 0x57b   : > { %1108 = vst.msk [vmem:[#allocation4 + $0x48] sm:$0xff] %vm1098_vm5, %v1079_v49  ;;  %2300 = vmatprep.subr.bf16.mxu0 %v2299_v52  ;;  %v1123_v3 = vmul.f32 %v3030_v59, %v2781_v8  ;;  %v1128_v5 = vmul.f32 %v3023_v53, %v2783_v9 }
 0x57c   : > { %2408 = vrot.lane.b32.xlu0 %v3028_v58, %s2682_s11 }
 0x57d   : > { %v1077_v60 = vpop.permute.xlu0 %1076  ;;  %v1075_v61 = vpop.permute.xlu1 %1074  ;;  %v3068_v15 = vld [vmem:[#allocation4 + $0x10] sm:$0xff] }
 0x57e   : > { %v3034_v62 = vld [vmem:[#allocation4] sm:$0xff]  ;;  %1107 = vst.msk [vmem:[#allocation4 + $0x40] sm:$0xff] %vm371_vm4, %v1077_v60  ;;  %v3038_v63 = vsel %vm371_vm4, %v1075_v61, %v1077_v60  ;;  %v3082_v24 = vpack.i.bf16 %v3068_v15, %v3012_v43 }
 0x57f   : > { %1105 = vst.msk [vmem:[#allocation4 + $0x30] sm:$0xff] %vm1098_vm5, %v1075_v61  ;;  %v3043_v0 = vpack.i.bf16 %v3030_v59, %v3034_v62  ;;  %v1121_v2 = vmul.f32 %v3034_v62, %v2781_v8  ;;  %v1126_v4 = vmul.f32 %v3038_v63, %v2783_v9 }
 0x580   : > { %2418 = vrot.lane.b32.xlu0 %v3028_v58, %s2680_s29 }
 0x581   : > { %2413 = vrot.lane.b32.xlu1 %v3043_v0, %s2682_s11  ;;  %v2301_v6 = vpack.c.bf16 %v1123_v3, %v1121_v2  ;;  %v3057_v7 = vpop.permute.xlu0 %1223  ;;  %v3059_v12 = vpop.permute.xlu1 %1221  ;;  %v2303_v13 = vpack.c.bf16 %v1128_v5, %v1126_v4 }
 0x582   : > { %v3064_v14 = vsel %vm433_vm8, %v3059_v12, %v3057_v7  ;;  %v1234_v9 = vmul.f32 %v3057_v7, %v3019_v50  ;;  %v3072_v17 = vld [vmem:[#allocation4 + $0x48] sm:$0xff]  ;;  %v1229_v44 = vmul.f32 %v3059_v12, %v3034_v62  ;;  %v1232_v45 = vmul.f32 %v3059_v12, %v3030_v59 }
 0x583   : > { %2302 = vmatpush1.bf16.msra.mxu0 %v2301_v6  ;;  %v1233_v16 = vmul.f32 %v3064_v14, %v3007_v37  ;;  %v1127_v32 = vmul.f32 %v3072_v17, %v2781_v8  ;;  %v1230_v47 = vmul.f32 %v3064_v14, %v3012_v43  ;;  %v1231_v49 = vmul.f32 %v3057_v7, %v3068_v15 }
 0x584   : > { %2304 = vmatprep.subr.bf16.mxu0 %v2303_v13  ;;  %v2442_v55 = vpack.i.bf16 %v1232_v45, %v1229_v44 }
 0x585   : > { %2423 = vrot.lane.b32.xlu1 %v3043_v0, %s2680_s29  ;;  %v3076_v18 = vpop.permute.xlu0 %1315  ;;  %v3078_v20 = vpop.permute.xlu1 %1313  ;;  %v2437_v22 = vpack.i.bf16 %v1234_v9, %v1233_v16  ;;  %v3163_v52 = vld [vmem:[#allocation4 + $0x40] sm:$0xff]  ;;  %v2467_v9 = vpack.i.bf16 %v1231_v49, %v1230_v47 }
 0x586   : > { %v3084_v25 = vld [vmem:[#allocation4 + $0x30] sm:$0xff]  ;;  %v3089_v27 = vsel %vm460_vm7, %v3078_v20, %v3076_v18  ;;  %v1326_v29 = vmul.f32 %v3076_v18, %v3019_v50  ;;  %v1321_v56 = vmul.f32 %v3078_v20, %v3034_v62  ;;  %v1324_v57 = vmul.f32 %v3078_v20, %v3030_v59 }
 0x587   : > { %v1125_v31 = vmul.f32 %v3084_v25, %v2781_v8  ;;  %2438 = vrot.lane.b32.xlu0 %v2437_v22, %s3598_s23  ;;  %v1325_v34 = vmul.f32 %v3089_v27, %v3007_v37  ;;  %v3136_v33 = vpack.i.bf16 %v3072_v17, %v3084_v25  ;;  %v3192_v13 = vpack.i.bf16 %v3163_v52, %v3038_v63 }
 0x588   : > { %v2452_v23 = vpack.i.bf16 %v1324_v57, %v1321_v56  ;;  %v1322_v16 = vmul.f32 %v3089_v27, %v3012_v43  ;;  %v1323_v22 = vmul.f32 %v3076_v18, %v3068_v15  ;;  %v1327_v45 = vmul.f32 %v3078_v20, %v3084_v25 }
 0x589   : > { %2428 = vrot.lane.b32.xlu1 %v3082_v24, %s2682_s11  ;;  %v2305_v35 = vpack.c.bf16 %v1127_v32, %v1125_v31  ;;  %v3102_v36 = vpop.permute.xlu0 %1479  ;;  %v3104_v38 = vpop.permute.xlu1 %1477  ;;  %v2447_v41 = vpack.i.bf16 %v1326_v29, %v1325_v34  ;;  %v1235_v32 = vmul.f32 %v3059_v12, %v3084_v25 }
 0x58a   : > { %v3109_v42 = vsel %vm506_vm9, %v3104_v38, %v3102_v36  ;;  %v1490_v8 = vmul.f32 %v3102_v36, %v3019_v50  ;;  %v1485_v19 = vmul.f32 %v3104_v38, %v3034_v62  ;;  %v1488_v21 = vmul.f32 %v3104_v38, %v3030_v59 }
 0x58b   : > { %2306 = vmatpush1.bf16.msra.mxu0 %v2305_v35  ;;  %2448 = vrot.lane.b32.xlu0 %v2447_v41, %s3599_s24  ;;  %v1489_v46 = vmul.f32 %v3109_v42, %v3007_v37  ;;  %v2472_v34 = vpack.i.bf16 %v1323_v22, %v1322_v16  ;;  %v1486_v35 = vmul.f32 %v3109_v42, %v3012_v43 }
 0x58c   : > { %v2462_v11 = vpack.i.bf16 %v1488_v21, %v1485_v19  ;;  %v1487_v41 = vmul.f32 %v3102_v36, %v3068_v15  ;;  %v1494_v57 = vmul.f32 %v3104_v38, %v3072_v17  ;;  %v1237_v19 = vmul.f32 %v3163_v52, %v3057_v7 }
 0x58d   : > { %2433 = vrot.lane.b32.xlu1 %v3082_v24, %s2680_s29  ;;  %v3122_v48 = vpop.permute.xlu0 %1571  ;;  %v3124_v51 = vpop.permute.xlu1 %1569  ;;  %v2457_v54 = vpack.i.bf16 %v1490_v8, %v1489_v46  ;;  %v1238_v8 = vmul.f32 %v3059_v12, %v3072_v17  ;;  %v1330_v46 = vmul.f32 %v3078_v20, %v3072_v17  ;;  %v1491_v12 = vmul.f32 %v3104_v38, %v3084_v25 }
 0x58e   : > { %v1573_v21 = vsel %vm534_vm10, %v3124_v51, %v3122_v48  ;;  %v1239_v38 = vmul.f32 %v3064_v14, %v3023_v53 }
 0x58f   : > { %2458 = vrot.lane.b32.xlu0 %v2457_v54, %s3600_s25  ;;  %v2522_v44 = vpack.i.bf16 %v1238_v8, %v1235_v32  ;;  %v2477_v54 = vpack.i.bf16 %v1487_v41, %v1486_v35  ;;  %v2532_v56 = vpack.i.bf16 %v1330_v46, %v1327_v45  ;;  %v2542_v20 = vpack.i.bf16 %v1494_v57, %v1491_v12 }
 0x590   : > { %v1581_v49 = vmul.f32 %v1573_v21, %v3007_v37  ;;  %v1578_v22 = vmul.f32 %v1573_v21, %v3012_v43  ;;  %v1328_v32 = vmul.f32 %v3089_v27, %v3038_v63  ;;  %v1583_v35 = vmul.f32 %v3124_v51, %v3084_v25 }
 0x591   : > { %2443 = vrot.lane.b32.xlu1 %v2442_v55, %s3598_s23  ;;  %v3132_v28 = vpop.permute.xlu0 %1735  ;;  %v1734_v30 = vpop.permute.xlu1 %1733  ;;  %v3220_v55 = vld [vmem:[#allocation4 + $0x58] sm:$0xff]  ;;  %v1586_v41 = vmul.f32 %v3124_v51, %v3072_v17  ;;  %v1577_v46 = vmul.f32 %v3124_v51, %v3034_v62 }
 0x592   : > { %v3144_v26 = vsel %vm580_vm1, %v1734_v30, %v3132_v28  ;;  %v3147_v39 = vmul.f32 %v1734_v30, %v3034_v62  ;;  %v3150_v40 = vmul.f32 %v1734_v30, %v3030_v59  ;;  %v3156_v10 = vmul.f32 %v3132_v28, %v3019_v50 }
 0x593   : > { %2488 = vrot.lane.b32.xlu0 %v3136_v33, %s2682_s11  ;;  %v3167_v60 = vmul.f32 %v3132_v28, %v3068_v15  ;;  %v3170_v61 = vmul.f32 %v1734_v30, %v3084_v25  ;;  %v3173_v2 = vmul.f32 %v1734_v30, %v3072_v17  ;;  %v3177_v3 = vmul.f32 %v3144_v26, %v3007_v37 }
 0x594   : > { %v2607_v4 = vpack.i.bf16 %v3150_v40, %v3147_v39  ;;  %v3188_v6 = vmul.f32 %v3144_v26, %v3012_v43  ;;  %v3230_v30 = vpack.i.bf16 %v3220_v55, %v3023_v53  ;;  %v1329_v37 = vmul.f32 %v3163_v52, %v3076_v18 }
 0x595   : > { %2453 = vrot.lane.b32.xlu1 %v2452_v23, %s3599_s24  ;;  %v2592_v5 = vpack.i.bf16 %v3156_v10, %v3177_v3  ;;  %v2642_v31 = vpack.i.bf16 %v3173_v2, %v3170_v61  ;;  %v1240_v23 = vmul.f32 %v3220_v55, %v3057_v7  ;;  %v1579_v7 = vmul.f32 %v3122_v48, %v3068_v15  ;;  %v2122_v61 = vld [vmem:[%s3584_s9 + $0x18] sm:$0xff]  ;;  %v2121_v2 = vld [vmem:[%s3584_s9 + $0x10] sm:$0xff] }
 0x596   : > { %v2587_v29 = vpack.i.bf16 %v3167_v60, %v3188_v6  ;;  %v1332_v43 = vmul.f32 %v3220_v55, %v3076_v18  ;;  %v2567_v15 = vpack.i.bf16 %v1329_v37, %v1328_v32  ;;  %v2572_v18 = vpack.i.bf16 %v1586_v41, %v1583_v35 }
 0x597   : > { %2498 = vrot.lane.b32.xlu0 %v3136_v33, %s2680_s29  ;;  %v2512_v16 = vpack.i.bf16 %v1240_v23, %v1239_v38  ;;  %v1580_v25 = vmul.f32 %v3124_v51, %v3030_v59  ;;  %v1588_v17 = vmul.f32 %v3122_v48, %v3220_v55  ;;  %v1493_v62 = vmul.f32 %v3102_v36, %v3163_v52 }
 0x598   : > { %v1492_v59 = vmul.f32 %v3109_v42, %v3038_v63  ;;  %v1749_v39 = vmul.f32 %v3132_v28, %v3163_v52  ;;  %v1748_v40 = vmul.f32 %v3144_v26, %v3038_v63 }
 0x599   : > { %2463 = vrot.lane.b32.xlu1 %v2462_v11, %s3600_s25  ;;  %v1236_v11 = vmul.f32 %v3064_v14, %v3038_v63 }
 0x59a   : > { %v2602_v12 = vpack.i.bf16 %v1493_v62, %v1492_v59  ;;  %v2632_v60 = vpack.i.bf16 %v1749_v39, %v1748_v40 }
 0x59b   : > { %2503 = vrot.lane.b32.xlu0 %v3192_v13, %s2682_s11  ;;  %v2547_v47 = vpack.i.bf16 %v1237_v19, %v1236_v11 }
 0x59d   : > { %2468 = vrot.lane.b32.xlu1 %v2467_v9, %s3598_s23  ;;  %v1582_v9 = vmul.f32 %v3122_v48, %v3019_v50  ;;  %v1331_v50 = vmul.f32 %v3089_v27, %v3023_v53  ;;  %v1496_v27 = vmul.f32 %v3220_v55, %v3102_v36  ;;  %v1584_v36 = vmul.f32 %v1573_v21, %v3038_v63  ;;  %v2087_v63 = vld [vmem:[%s3583_s8] sm:$0xff] }
 0x59f   : > { %2508 = vrot.lane.b32.xlu0 %v3192_v13, %s2680_s29  ;;  %v2552_v14 = vpack.i.bf16 %v1582_v9, %v1581_v49  ;;  %v2527_v8 = vpack.i.bf16 %v1332_v43, %v1331_v50 }
 0x5a1   : > { %2473 = vrot.lane.b32.xlu1 %v2472_v34, %s3599_s24  ;;  %v2517_v34 = vpack.i.bf16 %v1579_v7, %v1578_v22 }
 0x5a3   : > { %2523 = vrot.lane.b32.xlu0 %v2522_v44, %s3598_s23  ;;  %v1495_v44 = vmul.f32 %v3109_v42, %v3023_v53 }
 0x5a5   : > { %2478 = vrot.lane.b32.xlu1 %v2477_v54, %s3600_s25  ;;  %v2537_v45 = vpack.i.bf16 %v1496_v27, %v1495_v44  ;;  %v2557_v54 = vpack.i.bf16 %v1580_v25, %v1577_v46 }
 0x5a7   : > { %2533 = vrot.lane.b32.xlu0 %v2532_v56, %s3599_s24  ;;  %v1587_v56 = vmul.f32 %v1573_v21, %v3023_v53 }
 0x5a9   : > { %2483 = vrot.lane.b32.xlu1 %v3230_v30, %s2682_s11  ;;  %v2562_v51 = vpack.i.bf16 %v1588_v17, %v1587_v56 }
 0x5ab   : > { %2543 = vrot.lane.b32.xlu0 %v2542_v20, %s3600_s25 }
 0x5ad   : > { %2493 = vrot.lane.b32.xlu1 %v3230_v30, %s2680_s29 }
 0x5af   : > { %2548 = vrot.lane.b32.xlu0 %v2547_v47, %s3598_s23 }
 0x5b1   : > { %2513 = vrot.lane.b32.xlu1 %v2512_v16, %s3598_s23 }
 0x5b3   : > { %2553 = vrot.lane.b32.xlu0 %v2552_v14, %s3601_s26 }
 0x5b5   : > { %2518 = vrot.lane.b32.xlu1 %v2517_v34, %s3601_s26 }
 0x5b7   : > { %2568 = vrot.lane.b32.xlu0 %v2567_v15, %s3599_s24 }
 0x5b9   : > { %2528 = vrot.lane.b32.xlu1 %v2527_v8, %s3599_s24 }
 0x5bb   : > { %2573 = vrot.lane.b32.xlu0 %v2572_v18, %s3601_s26 }
 0x5bd   : > { %2538 = vrot.lane.b32.xlu1 %v2537_v45, %s3600_s25 }
 0x5bf   : > { %2583 = vrot.lane.b32.xlu0 %v3028_v58, %s3602_s27  ;;  %v1585_v58 = vmul.f32 %v3122_v48, %v3163_v52  ;;  %v1751_v48 = vmul.f32 %v3144_v26, %v3023_v53  ;;  %v2088_v53 = vld [vmem:[%s3583_s8 + $0x8] sm:$0xff]  ;;  %v2089_v26 = vld [vmem:[%s3583_s8 + $0x10] sm:$0xff]  ;;  %v2119_v52 = vld [vmem:[%s3584_s9] sm:$0xff] }
 0x5c1   : > { %2558 = vrot.lane.b32.xlu1 %v2557_v54, %s3601_s26  ;;  %v2617_v42 = vpack.i.bf16 %v1585_v58, %v1584_v36 }
 0x5c3   : > { %2593 = vrot.lane.b32.xlu0 %v2592_v5, %s3603_s28 }
 0x5c5   : > { %2563 = vrot.lane.b32.xlu1 %v2562_v51, %s3601_s26 }
 0x5c7   : > { %2603 = vrot.lane.b32.xlu0 %v2602_v12, %s3600_s25 }
 0x5c9   : > { %2578 = vrot.lane.b32.xlu1 %v3082_v24, %s3602_s27  ;;  %v1752_v24 = vmul.f32 %v3132_v28, %v3220_v55  ;;  %v2090_v28 = vld [vmem:[%s3583_s8 + $0x18] sm:$0xff] }
 0x5cb   : > { %2608 = vrot.lane.b32.xlu0 %v2607_v4, %s3603_s28  ;;  %v2627_v10 = vpack.i.bf16 %v1752_v24, %v1751_v48 }
 0x5cd   : > { %2588 = vrot.lane.b32.xlu1 %v2587_v29, %s3603_s28 }
 0x5cf   : > { %2618 = vrot.lane.b32.xlu0 %v2617_v42, %s3601_s26 }
 0x5d1   : > { %2598 = vrot.lane.b32.xlu1 %v3043_v0, %s3602_s27  ;;  %v1814_v0 = vld [vmem:[%s3582_s7 + $0x8] sm:$0xff] }
 0x5d2   : > { %1973 = vmatprep.mubr.f32.mxu0 %v1814_v0 }
 0x5d3   : > { %2623 = vrot.lane.b32.xlu0 %v3230_v30, %s3602_s27 }
 0x5d5   : > { %2613 = vrot.lane.b32.xlu1 %v3192_v13, %s3602_s27 }
 0x5d7   : > { %2628 = vrot.lane.b32.xlu0 %v2627_v10, %s3603_s28 }
 0x5d9   : > { %2633 = vrot.lane.b32.xlu1 %v2632_v60, %s3603_s28 }
 0x5db   : > { %2643 = vrot.lane.b32.xlu0 %v2642_v31, %s3603_s28 }
 0x5dd   : > { %2638 = vrot.lane.b32.xlu1 %v3136_v33, %s3602_s27  ;;  %v2120_v33 = vld [vmem:[%s3584_s9 + $0x8] sm:$0xff] }
 0x5df   : > { %2098 = vperm.xlu0 %2405, %v2088_v53  }
 0x5e1   : > { %2093 = vperm.xlu1 %2406, %v2087_v63  }
 0x5e3   : > { %2108 = vperm.xlu0 %2405, %v2090_v28  }
 0x5e5   : > { %2103 = vperm.xlu1 %2406, %v2089_v26  }
 0x5e7   : > { %2130 = vperm.xlu0 %2405, %v2120_v33  }
 0x5e9   : > { %2125 = vperm.xlu1 %2406, %v2119_v52  }
 0x5eb   : > { %2140 = vperm.xlu0 %2405, %v2122_v61  }
 0x5ed   : > { %2135 = vperm.xlu1 %2406, %v2121_v2  }
 0x5ee   : > { %v2409_v3 = vpop.permute.xlu0 %2408 }
 0x5ef   : > { %v2411_v13 = vunpack.i.h.bf16 %v2409_v3  ;;  %v2410_v29 = vunpack.i.l.bf16 %v2409_v3 }
 0x5f1   : > { %v1188_v23 = vsel %vm411_vm11, %v2410_v29, %v2411_v13 }
 0x5f2   : > { %v3362_v5 = vpop.permute.xlu0 %2418 }
 0x5f3   : > { %v2414_v4 = vpop.permute.xlu1 %2413 }
 0x5f4   : > { %v2416_v31 = vunpack.i.h.bf16 %v2414_v4  ;;  %v2415_v30 = vunpack.i.l.bf16 %v2414_v4 }
 0x5f6   : > { %v1187_v47 = vsel %vm411_vm11, %v2416_v31, %v2410_v29 }
 0x5f7   : > { %v3364_v6 = vpop.permute.xlu1 %2423 }
 0x5f9   : > { %v3366_v55 = vpop.permute.xlu0 %2438 }
 0x5fa   : > { %v2441_v25 = vunpack.i.h.bf16 %v3366_v55  ;;  %v2440_v17 = vunpack.i.l.bf16 %v3366_v55 }
 0x5fb   : > { %v2429_v57 = vpop.permute.xlu1 %2428 }
 0x5fc   : > { %v2431_v20 = vunpack.i.h.bf16 %v2429_v57  ;;  %v2430_v19 = vunpack.i.l.bf16 %v2429_v57  ;;  %v1280_v53 = vsel %vm448_vm15, %v2440_v17, %v2441_v25 }
 0x5fd   : > { %v3368_v21 = vpop.permute.xlu0 %2448 }
 0x5fe   : > { %v1186_v38 = vsel %vm411_vm11, %v2430_v19, %v2431_v20  ;;  %v1185_v11 = vsel %vm411_vm11, %v2415_v30, %v2430_v19  ;;  %v2451_v26 = vunpack.i.h.bf16 %v3368_v21  ;;  %v2450_v33 = vunpack.i.l.bf16 %v3368_v21 }
 0x5ff   : > { %v3374_v49 = vpop.permute.xlu1 %2433  ;;  %v2307_v9 = vpack.c.bf16 %v1188_v23, %v1186_v38  ;;  %v2309_v16 = vpack.c.bf16 %v1187_v47, %v1185_v11 }
 0x601   : > { %2308 = vmatprep.subr.bf16.mxu0 %v2307_v9  ;;  %v3376_v22 = vpop.permute.xlu0 %2458 }
 0x602   : > { %2310 = vmatpush1.bf16.msra.mxu0 %v2309_v16 }
 0x603   : > { %v2444_v7 = vpop.permute.xlu1 %2443 }
 0x604   : > { %v2446_v39 = vunpack.i.h.bf16 %v2444_v7  ;;  %v2445_v40 = vunpack.i.l.bf16 %v2444_v7 }
 0x605   : > { %v2489_v14 = vpop.permute.xlu0 %2488 }
 0x606   : > { %v2491_v56 = vunpack.i.h.bf16 %v2489_v14  ;;  %v2490_v62 = vunpack.i.l.bf16 %v2489_v14  ;;  %v1279_v31 = vsel %vm448_vm15, %v2446_v39, %v2440_v17 }
 0x607   : > { %v3378_v32 = vpop.permute.xlu1 %2453 }
 0x608   : > { %v2456_v9 = vunpack.i.h.bf16 %v3378_v32  ;;  %v2455_v16 = vunpack.i.l.bf16 %v3378_v32 }
 0x609   : > { %v3380_v37 = vpop.permute.xlu0 %2498 }
 0x60b   : > { %v3382_v34 = vpop.permute.xlu1 %2463 }
 0x60d   : > { %v2504_v50 = vpop.permute.xlu0 %2503 }
 0x60e   : > { %v2506_v44 = vunpack.i.h.bf16 %v2504_v50  ;;  %v2505_v27 = vunpack.i.l.bf16 %v2504_v50 }
 0x60f   : > { %v2469_v43 = vpop.permute.xlu1 %2468 }
 0x610   : > { %v2471_v18 = vunpack.i.h.bf16 %v2469_v43  ;;  %v2470_v45 = vunpack.i.l.bf16 %v2469_v43  ;;  %v1190_v12 = vsel %vm411_vm11, %v2505_v27, %v2506_v44  ;;  %v1189_v42 = vsel %vm411_vm11, %v2490_v62, %v2505_v27 }
 0x611   : > { %v3384_v15 = vpop.permute.xlu0 %2508  ;;  %v1372_v43 = vsel %vm476_vm0, %v2450_v33, %v2451_v26  ;;  %v1371_v62 = vsel %vm476_vm0, %v2456_v9, %v2450_v33 }
 0x612   : > { %v1278_v48 = vsel %vm448_vm15, %v2470_v45, %v2471_v18  ;;  %v1277_v28 = vsel %vm448_vm15, %v2445_v40, %v2470_v45  ;;  %v2421_v18 = vunpack.i.h.bf16 %v3362_v5  ;;  %v2420_v45 = vunpack.i.l.bf16 %v3362_v5 }
 0x613   : > { %v3386_v35 = vpop.permute.xlu1 %2473  ;;  %v2315_v63 = vpack.c.bf16 %v1280_v53, %v1278_v48  ;;  %v2317_v20 = vpack.c.bf16 %v1279_v31, %v1277_v28  ;;  %v2511_v26 = vunpack.i.h.bf16 %v3384_v15  ;;  %v2510_v33 = vunpack.i.l.bf16 %v3384_v15 }
 0x614   : > { %v2476_v52 = vunpack.i.h.bf16 %v3386_v35  ;;  %v2475_v61 = vunpack.i.l.bf16 %v3386_v35  ;;  %v2436_v35 = vunpack.i.h.bf16 %v3374_v49  ;;  %v2501_v15 = vunpack.i.h.bf16 %v3380_v37 }
 0x615   : > { %v2524_v41 = vpop.permute.xlu0 %2523 }
 0x616   : > { %v2525_v3 = vunpack.i.l.bf16 %v2524_v41  ;;  %v2526_v55 = vunpack.i.h.bf16 %v2524_v41  ;;  %v1370_v47 = vsel %vm476_vm0, %v2475_v61, %v2476_v52  ;;  %v2435_v41 = vunpack.i.l.bf16 %v3374_v49 }
 0x617   : > { %v3388_v8 = vpop.permute.xlu1 %2478  ;;  %v2323_v44 = vpack.c.bf16 %v1372_v43, %v1370_v47  ;;  %v1369_v27 = vsel %vm476_vm0, %v2455_v16, %v2475_v61 }
 0x618   : > { %v1442_v5 = vsel %vm494_vm13, %v2435_v41, %v2436_v35 }
 0x619   : > { %v3390_v46 = vpop.permute.xlu0 %2533 }
 0x61a   : > { %v2535_v32 = vunpack.i.l.bf16 %v3390_v46  ;;  %v2536_v49 = vunpack.i.h.bf16 %v3390_v46 }
 0x61b   : > { %v2484_v54 = vpop.permute.xlu1 %2483 }
 0x61c   : > { %v2486_v59 = vunpack.i.h.bf16 %v2484_v54  ;;  %v2485_v51 = vunpack.i.l.bf16 %v2484_v54 }
 0x61d   : > { %v3395_v58 = vpop.permute.xlu0 %2543 }
 0x61e   : > { %v1192_v36 = vsel %vm411_vm11, %v2485_v51, %v2486_v59  ;;  %v1191_v24 = vsel %vm411_vm11, %v2491_v56, %v2485_v51 }
 0x61f   : > { %v3401_v0 = vpop.permute.xlu1 %2493  ;;  %v2311_v10 = vpack.c.bf16 %v1192_v36, %v1190_v12  ;;  %v2313_v60 = vpack.c.bf16 %v1191_v24, %v1189_v42  ;;  %v2325_v12 = vpack.c.bf16 %v1371_v62, %v1369_v27  ;;  %v2546_v62 = vunpack.i.h.bf16 %v3395_v58 }
 0x620   : > { %v2496_v24 = vunpack.i.h.bf16 %v3401_v0  ;;  %v2495_v48 = vunpack.i.l.bf16 %v3401_v0  ;;  %v1444_v0 = vsel %vm494_vm13, %v2420_v45, %v2421_v18 }
 0x621   : > { %2312 = vmatprep.subr.bf16.mxu0 %v2311_v10  ;;  %v2549_v2 = vpop.permute.xlu0 %2548  ;;  %v2426_v10 = vunpack.i.h.bf16 %v3364_v6  ;;  %v2331_v52 = vpack.c.bf16 %v1444_v0, %v1442_v5 }
 0x622   : > { %2314 = vmatpush1.bf16.msra.mxu0 %v2313_v60  ;;  %v2551_v4 = vunpack.i.h.bf16 %v2549_v2  ;;  %v2550_v13 = vunpack.i.l.bf16 %v2549_v2  ;;  %v2425_v60 = vunpack.i.l.bf16 %v3364_v6  ;;  %v2481_v2 = vunpack.i.h.bf16 %v3388_v8 }
 0x623   : > { %v2514_v29 = vpop.permute.xlu1 %2513  ;;  %2316 = vmatprep.subr.bf16.mxu0 %v2315_v63  ;;  %v1448_v6 = vsel %vm494_vm13, %v2495_v48, %v2496_v24 }
 0x624   : > { %v2516_v57 = vunpack.i.h.bf16 %v2514_v29  ;;  %v2515_v30 = vunpack.i.l.bf16 %v2514_v29  ;;  %v1282_v19 = vsel %vm448_vm15, %v2550_v13, %v2551_v4  ;;  %v1281_v21 = vsel %vm448_vm15, %v2525_v3, %v2550_v13 }
 0x625   : > { %v3412_v38 = vpop.permute.xlu0 %2553  ;;  %v1441_v61 = vsel %vm494_vm13, %v2425_v60, %v2435_v41  ;;  %v2480_v3 = vunpack.i.l.bf16 %v3388_v8  ;;  %v2461_v13 = vunpack.i.h.bf16 %v3376_v22  ;;  %v2460_v29 = vunpack.i.l.bf16 %v3376_v22 }
 0x626   : > { %2318 = vmatpush1.bf16.msra.mxu0 %v2317_v20  ;;  %v1284_v23 = vsel %vm448_vm15, %v2515_v30, %v2516_v57  ;;  %v1283_v11 = vsel %vm448_vm15, %v2526_v55, %v2515_v30  ;;  %v1443_v55 = vsel %vm494_vm13, %v2426_v10, %v2420_v45  ;;  %v2500_v57 = vunpack.i.l.bf16 %v3380_v37 }
 0x627   : > { %v3419_v7 = vpop.permute.xlu1 %2518  ;;  %v2319_v14 = vpack.c.bf16 %v1284_v23, %v1282_v19  ;;  %v2321_v50 = vpack.c.bf16 %v1283_v11, %v1281_v21  ;;  %v2465_v8 = vunpack.i.l.bf16 %v3382_v34  ;;  %v2333_v30 = vpack.c.bf16 %v1443_v55, %v1441_v61 }
 0x628   : > { %v1446_v20 = vsel %vm494_vm13, %v2510_v33, %v2511_v26  ;;  %v2466_v19 = vunpack.i.h.bf16 %v3382_v34  ;;  %v1447_v23 = vsel %vm494_vm13, %v2501_v15, %v2495_v48  ;;  %v1445_v11 = vsel %vm494_vm13, %v2500_v57, %v2510_v33 }
 0x629   : > { %2320 = vmatprep.subr.bf16.mxu0 %v2319_v14  ;;  %v2569_v25 = vpop.permute.xlu0 %2568  ;;  %v2335_v21 = vpack.c.bf16 %v1448_v6, %v1446_v20  ;;  %v1534_v47 = vsel %vm522_vm14, %v2480_v3, %v2481_v2  ;;  %v1533_v9 = vsel %vm522_vm14, %v2465_v8, %v2480_v3  ;;  %v2556_v37 = vunpack.i.h.bf16 %v3412_v38 }
 0x62a   : > { %2322 = vmatpush1.bf16.msra.mxu0 %v2321_v50  ;;  %v2571_v17 = vunpack.i.h.bf16 %v2569_v25  ;;  %v2570_v54 = vunpack.i.l.bf16 %v2569_v25  ;;  %v2555_v16 = vunpack.i.l.bf16 %v3412_v38  ;;  %v2521_v14 = vunpack.i.h.bf16 %v3419_v7 }
 0x62b   : > { %v2529_v56 = vpop.permute.xlu1 %2528  ;;  %2324 = vmatprep.subr.bf16.mxu0 %v2323_v44  ;;  %v2520_v50 = vunpack.i.l.bf16 %v3419_v7  ;;  %v2337_v41 = vpack.c.bf16 %v1447_v23, %v1445_v11  ;;  %v1536_v44 = vsel %vm522_vm14, %v2460_v29, %v2461_v13  ;;  %v1535_v18 = vsel %vm522_vm14, %v2466_v19, %v2460_v29 }
 0x62c   : > { %v2531_v59 = vunpack.i.h.bf16 %v2529_v56  ;;  %v2530_v51 = vunpack.i.l.bf16 %v2529_v56  ;;  %v1374_v36 = vsel %vm476_vm0, %v2570_v54, %v2571_v17  ;;  %v1373_v42 = vsel %vm476_vm0, %v2535_v32, %v2570_v54 }
 0x62d   : > { %v3435_v39 = vpop.permute.xlu0 %2573  ;;  %v2339_v27 = vpack.c.bf16 %v1536_v44, %v1534_v47  ;;  %v2545_v45 = vunpack.i.l.bf16 %v3395_v58  ;;  %v2341_v25 = vpack.c.bf16 %v1535_v18, %v1533_v9  ;;  %v1626_v54 = vsel %vm549_vm2, %v2520_v50, %v2521_v14 }
 0x62e   : > { %2326 = vmatpush1.bf16.msra.mxu0 %v2325_v12  ;;  %v1376_v40 = vsel %vm476_vm0, %v2530_v51, %v2531_v59  ;;  %v1375_v46 = vsel %vm476_vm0, %v2536_v49, %v2530_v51  ;;  %v1628_v56 = vsel %vm549_vm2, %v2555_v16, %v2556_v37  ;;  %v2576_v24 = vunpack.i.h.bf16 %v3435_v39 }
 0x62f   : > { %v3441_v53 = vpop.permute.xlu1 %2538  ;;  %v2327_v63 = vpack.c.bf16 %v1376_v40, %v1374_v36  ;;  %v2329_v28 = vpack.c.bf16 %v1375_v46, %v1373_v42  ;;  %v2575_v48 = vunpack.i.l.bf16 %v3435_v39  ;;  %v2347_v58 = vpack.c.bf16 %v1628_v56, %v1626_v54 }
 0x630   : > { %v2541_v43 = vunpack.i.h.bf16 %v3441_v53  ;;  %v2540_v35 = vunpack.i.l.bf16 %v3441_v53 }
 0x631   : > { %2328 = vmatprep.subr.bf16.mxu0 %v2327_v63  ;;  %v3449_v4 = vpop.permute.xlu0 %2583 }
 0x632   : > { %2330 = vmatpush1.bf16.msra.mxu0 %v2329_v28  ;;  %v1540_v51 = vsel %vm522_vm14, %v2540_v35, %v2541_v43  ;;  %v1539_v28 = vsel %vm522_vm14, %v2546_v62, %v2540_v35  ;;  %v2586_v19 = vunpack.i.h.bf16 %v3449_v4 }
 0x633   : > { %v3455_v31 = vpop.permute.xlu1 %2558  ;;  %2332 = vmatprep.subr.bf16.mxu0 %v2331_v52 }
 0x634   : > { %v2561_v49 = vunpack.i.h.bf16 %v3455_v31  ;;  %v2560_v59 = vunpack.i.l.bf16 %v3455_v31 }
 0x635   : > { %v2594_v22 = vpop.permute.xlu0 %2593 }
 0x636   : > { %2334 = vmatpush1.bf16.msra.mxu0 %v2333_v30  ;;  %v2596_v12 = vunpack.i.h.bf16 %v2594_v22  ;;  %v2595_v36 = vunpack.i.l.bf16 %v2594_v22  ;;  %v1625_v2 = vsel %vm549_vm2, %v2560_v59, %v2520_v50  ;;  %v1627_v3 = vsel %vm549_vm2, %v2561_v49, %v2555_v16 }
 0x637   : > { %v3470_v34 = vpop.permute.xlu1 %2563  ;;  %2336 = vmatprep.subr.bf16.mxu0 %v2335_v21  ;;  %v2585_v21 = vunpack.i.l.bf16 %v3449_v4  ;;  %v2349_v23 = vpack.c.bf16 %v1627_v3, %v1625_v2  ;;  %v1816_v2 = vld [vmem:[%s3582_s7 + $0x18] sm:$0xff] }
 0x638   : > { %v2566_v10 = vunpack.i.h.bf16 %v3470_v34  ;;  %v2565_v26 = vunpack.i.l.bf16 %v3470_v34  ;;  %v1792_v39 = vsel %vm595_vm3, %v2595_v36, %v2596_v12  ;;  %v1820_v3 = vld [vmem:[%s3582_s7 + $0x38] sm:$0xff] }
 0x639   : > { %v2604_v38 = vpop.permute.xlu0 %2603  ;;  %v1700_v18 = vsel %vm568_vm12, %v2585_v21, %v2586_v19 }
 0x63a   : > { %2338 = vmatpush1.bf16.msra.mxu0 %v2337_v41  ;;  %v2606_v32 = vunpack.i.h.bf16 %v2604_v38  ;;  %v2605_v7 = vunpack.i.l.bf16 %v2604_v38  ;;  %v1632_v22 = vsel %vm549_vm2, %v2565_v26, %v2566_v10  ;;  %v1631_v4 = vsel %vm549_vm2, %v2576_v24, %v2565_v26 }
 0x63b   : > { %v3477_v17 = vpop.permute.xlu1 %2578  ;;  %2340 = vmatprep.subr.bf16.mxu0 %v2339_v27 }
 0x63c   : > { %v1538_v42 = vsel %vm522_vm14, %v2605_v7, %v2606_v32  ;;  %v1537_v5 = vsel %vm522_vm14, %v2545_v45, %v2605_v7  ;;  %v2581_v6 = vunpack.i.h.bf16 %v3477_v17  ;;  %v2580_v13 = vunpack.i.l.bf16 %v3477_v17 }
 0x63d   : > { %v2609_v40 = vpop.permute.xlu0 %2608  ;;  %v2343_v46 = vpack.c.bf16 %v1540_v51, %v1538_v42  ;;  %v2345_v52 = vpack.c.bf16 %v1539_v28, %v1537_v5 }
 0x63e   : > { %2342 = vmatpush1.bf16.msra.mxu0 %v2341_v25  ;;  %v2611_v60 = vunpack.i.h.bf16 %v2609_v40  ;;  %v2610_v53 = vunpack.i.l.bf16 %v2609_v40  ;;  %v1698_v50 = vsel %vm568_vm12, %v2580_v13, %v2581_v6  ;;  %v1821_v6 = vld [vmem:[%s3582_s7 + $0x40] sm:$0xff] }
 0x63f   : > { %v2589_v63 = vpop.permute.xlu1 %2588  ;;  %2344 = vmatprep.subr.bf16.mxu0 %v2343_v46  ;;  %v2355_v45 = vpack.c.bf16 %v1700_v18, %v1698_v50 }
 0x640   : > { %v2591_v33 = vunpack.i.h.bf16 %v2589_v63  ;;  %v2590_v0 = vunpack.i.l.bf16 %v2589_v63  ;;  %v1791_v61 = vsel %vm595_vm3, %v2611_v60, %v2595_v36 }
 0x641   : > { %v2619_v15 = vpop.permute.xlu0 %2618 }
 0x642   : > { %v1789_v29 = vsel %vm595_vm3, %v2610_v53, %v2590_v0  ;;  %2346 = vmatpush1.bf16.msra.mxu0 %v2345_v52  ;;  %v1790_v31 = vsel %vm595_vm3, %v2590_v0, %v2591_v33  ;;  %v2621_v57 = vunpack.i.h.bf16 %v2619_v15  ;;  %v2620_v8 = vunpack.i.l.bf16 %v2619_v15  ;;  %v1815_v0 = vld [vmem:[%s3582_s7 + $0x10] sm:$0xff]  ;;  %v1813_v52 = vld [vmem:[%s3582_s7] sm:$0xff]  ;;  %v1824_v15 = vld [vmem:[%s3582_s7 + $0x58] sm:$0xff] }
 0x643   : > { %v2365_v55 = vpack.c.bf16 %v1791_v61, %v1789_v29  ;;  %v2599_v30 = vpop.permute.xlu1 %2598  ;;  %2348 = vmatprep.subr.bf16.mxu0 %v2347_v58  ;;  %v2363_v20 = vpack.c.bf16 %v1792_v39, %v1790_v31  ;;  %v1817_v61 = vld [vmem:[%s3582_s7 + $0x20] sm:$0xff]  ;;  %v1818_v39 = vld [vmem:[%s3582_s7 + $0x28] sm:$0xff]  ;;  %v1823_v29 = vld [vmem:[%s3582_s7 + $0x50] sm:$0xff] }
 0x644   : > { %v2601_v11 = vunpack.i.h.bf16 %v2599_v30  ;;  %v2600_v47 = vunpack.i.l.bf16 %v2599_v30  ;;  %v1630_v9 = vsel %vm549_vm2, %v2620_v8, %v2621_v57  ;;  %v1629_v37 = vsel %vm549_vm2, %v2575_v48, %v2620_v8  ;;  %v1822_v31 = vld [vmem:[%s3582_s7 + $0x48] sm:$0xff] }
 0x645   : > { %2364 = vmatprep.subr.bf16.mxu1 %v2363_v20  ;;  %v2624_v16 = vpop.permute.xlu0 %2623  ;;  %v2351_v14 = vpack.c.bf16 %v1632_v22, %v1630_v9  ;;  %v2353_v27 = vpack.c.bf16 %v1631_v4, %v1629_v37 }
 0x646   : > { %2350 = vmatpush1.bf16.msra.mxu0 %v2349_v23  ;;  %2366 = vmatpush1.bf16.msra.mxu1 %v2365_v55  ;;  %v2626_v34 = vunpack.i.h.bf16 %v2624_v16  ;;  %v2625_v43 = vunpack.i.l.bf16 %v2624_v16  ;;  %v1697_v38 = vsel %vm568_vm12, %v2600_v47, %v2580_v13  ;;  %v1699_v25 = vsel %vm568_vm12, %v2601_v11, %v2585_v21  ;;  %v1819_v13 = vld [vmem:[%s3582_s7 + $0x30] sm:$0xff] }
 0x647   : > { %v2614_v35 = vpop.permute.xlu1 %2613  ;;  %2352 = vmatprep.subr.bf16.mxu0 %v2351_v14  ;;  %v2357_v51 = vpack.c.bf16 %v1699_v25, %v1697_v38 }
 0x648   : > { %v2616_v41 = vunpack.i.h.bf16 %v2614_v35  ;;  %v2615_v44 = vunpack.i.l.bf16 %v2614_v35  ;;  %v1704_v17 = vsel %vm568_vm12, %v2625_v43, %v2626_v34 }
 0x649   : > { %v2629_v32 = vpop.permute.xlu0 %2628 }
 0x64a   : > { %2354 = vmatpush1.bf16.msra.mxu0 %v2353_v27  ;;  %v1702_v7 = vsel %vm568_vm12, %v2615_v44, %v2616_v41  ;;  %v2631_v54 = vunpack.i.h.bf16 %v2629_v32  ;;  %v2630_v56 = vunpack.i.l.bf16 %v2629_v32 }
 0x64b   : > { %v2634_v62 = vpop.permute.xlu1 %2633  ;;  %2356 = vmatprep.subr.bf16.mxu0 %v2355_v45  ;;  %v2359_v12 = vpack.c.bf16 %v1704_v17, %v1702_v7 }
 0x64c   : > { %v2636_v49 = vunpack.i.h.bf16 %v2634_v62  ;;  %v2635_v59 = vunpack.i.l.bf16 %v2634_v62  ;;  %v1796_v36 = vsel %vm595_vm3, %v2630_v56, %v2631_v54 }
 0x64d   : > { %v2644_v42 = vpop.permute.xlu0 %2643 }
 0x64e   : > { %2358 = vmatpush1.bf16.msra.mxu0 %v2357_v51  ;;  %v1794_v5 = vsel %vm595_vm3, %v2635_v59, %v2636_v49  ;;  %v2646_v24 = vunpack.i.h.bf16 %v2644_v42  ;;  %v2645_v48 = vunpack.i.l.bf16 %v2644_v42 }
 0x64f   : > { %v2639_v40 = vpop.permute.xlu1 %2638  ;;  %2360 = vmatprep.subr.bf16.mxu0 %v2359_v12  ;;  %v2367_v46 = vpack.c.bf16 %v1796_v36, %v1794_v5 }
 0x650   : > { %v2641_v58 = vunpack.i.h.bf16 %v2639_v40  ;;  %v2640_v10 = vunpack.i.l.bf16 %v2639_v40  ;;  %v1793_v60 = vsel %vm595_vm3, %v2645_v48, %v2635_v59  ;;  %v1795_v53 = vsel %vm595_vm3, %v2646_v24, %v2630_v56 }
 0x651   : > { %2368 = vmatprep.subr.bf16.mxu1 %v2367_v46  ;;  %v2369_v63 = vpack.c.bf16 %v1795_v53, %v1793_v60 }
 0x652   : > { %v1701_v28 = vsel %vm568_vm12, %v2640_v10, %v2615_v44  ;;  %v1703_v26 = vsel %vm568_vm12, %v2641_v58, %v2625_v43 }
 0x653   : > { %v2361_v33 = vpack.c.bf16 %v1703_v26, %v1701_v28  ;;  %2370 = vmatpush1.bf16.msra.mxu1 %v2369_v63 }
 0x655   : > { %2362 = vmatpush1.bf16.msra.mxu0 %v2361_v33 }
 0x656   : > { %2248 = vmatmul.mubr.msk.f32.vlgmr.msra.gmra.mrb[14].mxu1 %vm534_vm10, %v1815_v0 }
 0x657   : > { %2068 = vmatprep.mubr.f32.mxu1 %v2673_v1 }
 0x658   : > { %1974 = vmatmul.mubr.f32.vlgmr.msra.gmra.mrb[0].mxu0 %v1813_v52 }
 0x659   : > { %1979 = vmatprep.mubr.f32.mxu0 %v1817_v61 }
 0x65a   : > { %2249 = vmatmul.mubr.msk.f32.gmra.mrb[16].mxu1 %vm534_vm10, %v1818_v39 }
 0x65b   : > { %2074 = vmatprep.mubr.f32.mxu1 %v2673_v1 }
 0x65c   : > { %1980 = vmatmul.mubr.f32.gmra.mrb[2].mxu0 %v1816_v2 }
 0x65d   : > { %1985 = vmatprep.mubr.f32.mxu0 %v1820_v3 }
 0x65e   : > { %2250 = vmatmul.mubr.msk.f32.gmra.mrb[18].mxu1 %vm534_vm10, %v1821_v6  ;;  %v2099_v57 = vpop.permute.xlu0 %2098 }
 0x65f   : > { %2080 = vmatprep.mubr.f32.mxu1 %v2673_v1 }
 0x660   : > { %1986 = vmatmul.mubr.f32.gmra.mrb[4].mxu0 %v1819_v13  ;;  %v2094_v55 = vpop.permute.xlu1 %2093 }
 0x661   : > { %1991 = vmatprep.mubr.f32.mxu0 %v1823_v29 }
 0x662   : > { %2251 = vmatmul.mubr.msk.f32.gmra.mrb[20].mxu1 %vm534_vm10, %v1824_v15  ;;  %v2109_v1 = vpop.permute.xlu0 %2108 }
 0x664   : > { %1992 = vmatmul.mubr.f32.gmra.mrb[6].mxu0 %v1822_v31  ;;  %v2104_v8 = vpop.permute.xlu1 %2103 }
 0x666   : > { %v2131_v41 = vpop.permute.xlu0 %2130 }
 0x668   : > { %v2126_v11 = vpop.permute.xlu1 %2125 }
 0x66a   : > { %v2141_v63 = vpop.permute.xlu0 %2140 }
 0x66c   : > { %v2136_v49 = vpop.permute.xlu1 %2135 }
 0x729   : > { %v2064_v30 = vpop.f32.mrb[14].mxu1 }
 0x72a   : > { %v2066_v19 = vpop.f32.mrb[15].mxu1 }
 0x72b   : > { %v1975_v20 = vpop.f32.mrb[0].mxu0 }
 0x72c   : > { %v2065_v21 = vadd.f32 %v2064_v30, %v1975_v20  ;;  %v1977_v23 = vpop.f32.mrb[1].mxu0 }
 0x72d   : > { %v2067_v22 = vadd.f32 %v2066_v19, %v1977_v23  ;;  %v2070_v9 = vpop.f32.mrb[16].mxu1 }
 0x72e   : > { %v2111_v47 = vmul.f32 %v2094_v55, %v2065_v21  ;;  %v2072_v14 = vpop.f32.mrb[17].mxu1 }
 0x72f   : > { %v2112_v37 = vmul.f32 %v2094_v55, %v2067_v22  ;;  %v1981_v16 = vpop.f32.mrb[2].mxu0 }
 0x730   : > { %v2143_v50 = vadd.f32 %v2126_v11, %v2111_v47  ;;  %v2071_v34 = vadd.f32 %v2070_v9, %v1981_v16  ;;  %v1983_v43 = vpop.f32.mrb[3].mxu0 }
 0x731   : > { %v2144_v35 = vadd.f32 %v2126_v11, %v2112_v37  ;;  %v2073_v4 = vadd.f32 %v2072_v14, %v1983_v43  ;;  %v2076_v18 = vpop.f32.mrb[18].mxu1 }
 0x732   : > { %v2151_v44 = vmax.f32 %v2143_v50, 0.0  ;;  %v2113_v27 = vmul.f32 %v2099_v57, %v2071_v34  ;;  %v2078_v32 = vpop.f32.mrb[19].mxu1 }
 0x733   : > { %v2152_v45 = vmax.f32 %v2144_v35, 0.0  ;;  %v2114_v38 = vmul.f32 %v2099_v57, %v2073_v4  ;;  %v1987_v25 = vpop.f32.mrb[4].mxu0 }
 0x734   : > { %2159 = vst [vmem:[%s3562_s18] sm:$0xff] %v2151_v44  ;;  %v2145_v7 = vadd.f32 %v2131_v41, %v2113_v27  ;;  %v2077_v17 = vadd.f32 %v2076_v18, %v1987_v25  ;;  %v1989_v54 = vpop.f32.mrb[5].mxu0 }
 0x735   : > { %2160 = vst [vmem:[%s3562_s18 + $0x8] sm:$0xff] %v2152_v45  ;;  %v2146_v56 = vadd.f32 %v2131_v41, %v2114_v38  ;;  %v2079_v62 = vadd.f32 %v2078_v32, %v1989_v54  ;;  %v2082_v12 = vpop.f32.mrb[20].mxu1 }
 0x736   : > { %v2153_v59 = vmax.f32 %v2145_v7, 0.0  ;;  %v2115_v51 = vmul.f32 %v2104_v8, %v2077_v17  ;;  %v2084_v24 = vpop.f32.mrb[21].mxu1 }
 0x737   : > { %v2154_v36 = vmax.f32 %v2146_v56, 0.0  ;;  %v2116_v42 = vmul.f32 %v2104_v8, %v2079_v62  ;;  %v1993_v5 = vpop.f32.mrb[6].mxu0 }
 0x738   : > { %2161 = vst [vmem:[%s3562_s18 + $0x10] sm:$0xff] %v2153_v59  ;;  %v2147_v48 = vadd.f32 %v2136_v49, %v2115_v51  ;;  %v2083_v40 = vadd.f32 %v2082_v12, %v1993_v5  ;;  %v1995_v46 = vpop.f32.mrb[7].mxu0 }
 0x739   : > { %2162 = vst [vmem:[%s3562_s18 + $0x18] sm:$0xff] %v2154_v36  ;;  %v2148_v58 = vadd.f32 %v2136_v49, %v2116_v42  ;;  %v2085_v10 = vadd.f32 %v2084_v24, %v1995_v46 }
 0x73a   : > { %v2155_v60 = vmax.f32 %v2147_v48, 0.0  ;;  %v2117_v53 = vmul.f32 %v2109_v1, %v2083_v40 }
 0x73b   : > { %v2156_v28 = vmax.f32 %v2148_v58, 0.0  ;;  %v2118_v26 = vmul.f32 %v2109_v1, %v2085_v10 }
 0x73c   : > { %2163 = vst [vmem:[%s3562_s18 + $0x20] sm:$0xff] %v2155_v60  ;;  %v2149_v33 = vadd.f32 %v2141_v63, %v2117_v53 }
 0x73d   : > { %2164 = vst [vmem:[%s3562_s18 + $0x28] sm:$0xff] %v2156_v28  ;;  %v2150_v0 = vadd.f32 %v2141_v63, %v2118_v26 }
 0x73e   : > { %v2157_v52 = vmax.f32 %v2149_v33, 0.0 }
 0x73f   : > { %v2158_v61 = vmax.f32 %v2150_v0, 0.0 }
 0x740   : > { %2165 = vst [vmem:[%s3562_s18 + $0x30] sm:$0xff] %v2157_v52 }
 0x741   : > { %2166 = vst [vmem:[%s3562_s18 + $0x38] sm:$0xff] %v2158_v61 }
 0x742 PF: > { %s20_s13 = sadd.s32 1, %s2671_s13  }
 0x743   : > { %p17_p4 = scmp.ge.s32.totalorder %s20_s13, 4  }
 0x745   :  { %19 = sbr.rel (!%p17_p4) target bundleno = 1 (0x1), region = 91 }

</bundles_post_ra>
